<compile_context>
chip_gen: v5e
topology: v5e:2x2
jax: 0.10.0
libtpu: 0.0.40
codegen_flags: <defaults>
</compile_context>

<pallas_src>
import functools

import jax
import jax.numpy as jnp
from jax.experimental import pallas as pl
from jax.experimental.pallas import tpu as pltpu

LANE = 128
SUBLANE = 8


def _round_up(x, m):
    return ((x + m - 1) // m) * m


# ----------------------------- Pallas kernel ------------------------------- #
def tcn_kernel(*refs, K, dilations, has_ds):
    """Fused TemporalConvNet forward on a channels-last (rows, channels) slab.

    refs layout:
      refs[0]  : t_local (rows, 1) int32 -- time index of each row in its sequence
      refs[1]  : x       (rows, C0_p)    -- input slab (channels lane-padded)
      per block b (4 refs):
        w1[b]  : (K*Cin_p, Cout_p) bf16, or (K*Cin_p, 2*Cout_p) when the block
                 has a downsample (1x1 wd folded into the extra output columns,
                 placed in the tap-(K-1) rows)
        b1[b]  : (1, Cout_p) / (1, 2*Cout_p) f32
        w2[b]  : (K*Cout_p, Cout_p) bf16
        b2[b]  : (1, Cout_p) f32
      refs[-1] : out     (rows, Cout_p_last)

    bf16 MXU operands, f32 accumulation.  Dropout is identity (inference).
    """
    f32, bf16 = jnp.float32, jnp.bfloat16
    t_ref, x_ref, out_ref = refs[0], refs[1], refs[-1]
    blk_refs = refs[2:-1]
    n_blocks = len(dilations)
    assert len(blk_refs) == 4 * n_blocks

    t_local = t_ref[...]                                  # (rows, 1) int32

    def causal_im2col(v, dilation):
        # v: (rows, C) f32 -> (rows, K*C) bf16.  Tap k reads v[t - (K-1-k)*dil];
        # rows whose shifted index falls before the start of their own sequence
        # are zeroed (== the causal left zero-pad), which also removes the roll
        # wrap-around and any cross-batch leakage of the flattened layout.
        cols = []
        for k in range(K):
            shift = (K - 1 - k) * dilation
            if shift == 0:
                vk = v
            else:
                vk = jnp.where(t_local < shift, 0.0,
                               pltpu.roll(v, shift=shift, axis=0))
            cols.append(vk.astype(bf16))
        return cols[0] if K == 1 else jnp.concatenate(cols, axis=1)

    h = x_ref[...].astype(f32)                            # (rows, C0_p)
    for b in range(n_blocks):
        w1 = blk_refs[4 * b + 0][...]
        b1 = blk_refs[4 * b + 1][...].astype(f32)
        w2 = blk_refs[4 * b + 2][...]
        b2 = blk_refs[4 * b + 3][...].astype(f32)
        dil = dilations[b]
        c_out = w2.shape[1]

        # conv1 (causal, dilated) [+ folded 1x1 downsample] -> chomp -> ReLU
        y1 = jnp.dot(causal_im2col(h, dil), w1, preferred_element_type=f32) + b1
        if has_ds[b]:
            h1 = jnp.maximum(y1[:, :c_out], 0.0)
            res = y1[:, c_out:]                           # downsample(x) + bd
        else:
            h1 = jnp.maximum(y1, 0.0)
            res = h                                       # identity residual

        # conv2 (causal, dilated) -> chomp -> ReLU
        h2 = jnp.dot(causal_im2col(h1, dil), w2, preferred_element_type=f32) + b2
        h2 = jnp.maximum(h2, 0.0)

        h = jnp.maximum(h2 + res, 0.0)                    # residual add + ReLU

    out_ref[...] = h.astype(out_ref.dtype)


# ----------------------------- weight packing ------------------------------- #
def weight_norm_weight(v, g):
    """PyTorch weight_norm (dim=0): w = g * v / ||v||, norm over (Cin, K)."""
    norm = jnp.sqrt(jnp.sum(v * v, axis=(1, 2), keepdims=True))
    return g[:, None, None] * v / norm


def _prep_block(p, *, K, cin, cin_p, n_outputs):
    """Pad + repack one TemporalBlock's weights for the fused kernel."""
    f32, bf16 = jnp.float32, jnp.bfloat16
    cout = n_outputs
    cout_p = max(LANE, _round_up(cout, LANE))

    def pack_conv(v, g, in_c, in_p):
        w = weight_norm_weight(v, g)                      # (cout, in_c, K)
        w = jnp.transpose(w, (2, 1, 0))                   # (K, in_c, cout) tap-major
        w = jnp.pad(w, ((0, 0), (0, in_p - in_c), (0, cout_p - cout)))
        return w.reshape(K * in_p, cout_p)

    w1 = pack_conv(p['v1'], p['g1'], cin, cin_p)          # (K*cin_p, cout_p)
    w2 = pack_conv(p['v2'], p['g2'], cout, cout_p)        # (K*cout_p, cout_p)
    b1 = jnp.pad(p['b1'], (0, cout_p - cout)).reshape(1, cout_p)
    b2 = jnp.pad(p['b2'], (0, cout_p - cout)).reshape(1, cout_p)

    has_ds = p.get('wd') is not None
    if has_ds:
        # Fold the 1x1 downsample into conv1: tap K-1 of the im2col IS x
        # (shift 0), so place wd in those rows of extra cout_p output columns.
        wd = jnp.transpose(p['wd'][:, :, 0], (1, 0))      # (cin, cout)
        wd = jnp.pad(wd, ((0, cin_p - cin), (0, cout_p - cout)))
        wd_lift = jnp.zeros((K * cin_p, cout_p), f32)
        wd_lift = wd_lift.at[(K - 1) * cin_p:, :].set(wd)
        w1 = jnp.concatenate([w1, wd_lift], axis=1)       # (K*cin_p, 2*cout_p)
        bd = jnp.pad(p['bd'], (0, cout_p - cout)).reshape(1, cout_p)
        b1 = jnp.concatenate([b1, bd], axis=1)            # (1, 2*cout_p)
    else:
        assert cin == cout and cin_p == cout_p, "identity residual needs equal channels"

    arrays = (w1.astype(bf16), b1.astype(f32), w2.astype(bf16), b2.astype(f32))
    return arrays, has_ds, cout, cout_p


def _pick_batch_chunk(N, L_p, row_target):
    """Largest divisor of N whose rows fit the budget; keep >=2 grid steps when
    N >= 2 (v7x has two TensorCores); fall back to nb=1 otherwise."""
    for cand in range(N, 0, -1):
        if N % cand:
            continue
        if cand * L_p > row_target and cand > 1:
            continue
        if N >= 2 and N // cand < 2 and cand > 1:
            continue
        return cand
    return 1


# ----------------------------- JAX glue / wrapper --------------------------- #
def temporal_conv_net(x_ncl, blocks, *, kernel_size, row_target=1024):
    """TemporalConvNet forward (the `tcn` core of TCN_Davies), fused into one
    pallas_call.  x_ncl: (N, C_in, L) PyTorch NCL layout.  Returns (N, C_out, L)."""
    N, C_in, L = x_ncl.shape
    K = kernel_size
    f32 = jnp.float32

    # NCL -> NLC (channels on lanes); lane-pad channels, sublane-pad time.
    # Right-padding time is inert for causal convs (never read forward).
    L_p = _round_up(L, SUBLANE)
    Cin_p = max(LANE, _round_up(C_in, LANE))
    h = jnp.transpose(x_ncl, (0, 2, 1)).astype(f32)       # (N, L, C_in)
    h = jnp.pad(h, ((0, 0), (0, L_p - L), (0, Cin_p - C_in)))

    # Per-block weight packing (weight-norm, im2col layout, folded downsample).
    blk_arrays, dilations, has_ds = [], [], []
    cin, cin_p = C_in, Cin_p
    for i, p in enumerate(blocks):
        n_out = p['b1'].shape[0]
        arrays, ds, cout, cout_p = _prep_block(p, K=K, cin=cin, cin_p=cin_p,
                                               n_outputs=n_out)
        blk_arrays.extend(arrays)
        dilations.append(2 ** i)
        has_ds.append(ds)
        cin, cin_p = cout, cout_p
    Cout_last, Cout_last_p = cin, cin_p

    # Flatten batch into the matmul M dimension; chunk whole sequences.
    M = N * L_p
    x2d = h.reshape(M, Cin_p)
    nb = _pick_batch_chunk(N, L_p, row_target)
    rows = nb * L_p
    grid = (N // nb,)

    # Time index of each row inside its own sequence (same for every chunk).
    t_local = (jnp.arange(rows, dtype=jnp.int32) % L_p).reshape(rows, 1)

    const = lambda *_: (0, 0)        # VMEM-resident constants (t_local, weights)
    in_specs = [pl.BlockSpec((rows, 1), const),
                pl.BlockSpec((rows, Cin_p), lambda i: (i, 0))]
    for a in blk_arrays:
        in_specs.append(pl.BlockSpec(a.shape, const))

    kernel = functools.partial(tcn_kernel, K=K, dilations=tuple(dilations),
                               has_ds=tuple(has_ds))
    out2d = pl.pallas_call(
        kernel,
        out_shape=jax.ShapeDtypeStruct((M, Cout_last_p), f32),
        grid=grid,
        in_specs=in_specs,
        out_specs=pl.BlockSpec((rows, Cout_last_p), lambda i: (i, 0)),
        compiler_params=pltpu.CompilerParams(
            dimension_semantics=("parallel",),            # shard chunks on v7x's 2 TCs
            vmem_limit_bytes=32 * 1024 * 1024),
    )(t_local, x2d, *blk_arrays)

    out = out2d.reshape(N, L_p, Cout_last_p)[:, :L, :Cout_last]
    return jnp.transpose(out, (0, 2, 1))                  # back to NCL


# ----------------------------- pure-JAX reference --------------------------- #
def reference_tcn(x_ncl, blocks, *, kernel_size):
    def conv1d(x, w, b, dil, pad):
        y = jax.lax.conv_general_dilated(
            x, w, window_strides=(1,), padding=[(pad, pad)],
            rhs_dilation=(dil,), dimension_numbers=('NCH', 'OIH', 'NCH'),
            precision=jax.lax.Precision.HIGHEST)
        return y + b[None, :, None]

    h = x_ncl
    for i, p in enumerate(blocks):
        dilation = 2 ** i
        padding = (kernel_size - 1) * dilation
        L = h.shape[2]
        w1 = weight_norm_weight(p['v1'], p['g1'])
        w2 = weight_norm_weight(p['v2'], p['g2'])
        o = conv1d(h, w1, p['b1'], dilation, padding)[:, :, :L]   # chomp1
        o = jnp.maximum(o, 0.0)                                   # relu1 (+dropout eval)
        o = conv1d(o, w2, p['b2'], dilation, padding)[:, :, :L]   # chomp2
        o = jnp.maximum(o, 0.0)                                   # relu2 (+dropout eval)
        if p.get('wd') is not None:
            res = conv1d(h, p['wd'], p['bd'], 1, 0)               # downsample
        else:
            res = h                                               # identity residual
        h = jnp.maximum(o + res, 0.0)
    return h


# ----------------------------------- main ----------------------------------- #
if __name__ == "__main__":
    # TCN core of TCN_Davies: TemporalConvNet(num_inputs=16, num_channels=[nhid]*levels,
    # kernel_size=3).  Small shapes: batch=2, 16 input channels, nhid=32, levels=2, L=32.
    N, C_in, L = 2, 16, 32
    nhid, levels, K = 32, 2, 3

    key = jax.random.PRNGKey(0)
    blocks = []
    n_in = C_in
    for i in range(levels):
        key, *ks = jax.random.split(key, 9)
        p = {
            'v1': 0.01 * jax.random.normal(ks[0], (nhid, n_in, K), jnp.float32),
            'g1': jax.random.uniform(ks[1], (nhid,), jnp.float32, 0.5, 1.5),
            'b1': 0.1 * jax.random.normal(ks[2], (nhid,), jnp.float32),
            'v2': 0.01 * jax.random.normal(ks[3], (nhid, nhid, K), jnp.float32),
            'g2': jax.random.uniform(ks[4], (nhid,), jnp.float32, 0.5, 1.5),
            'b2': 0.1 * jax.random.normal(ks[5], (nhid,), jnp.float32),
        }
        if n_in != nhid:   # first level: downsample 1x1 conv (n_inputs != n_outputs)
            p['wd'] = 0.01 * jax.random.normal(ks[6], (nhid, n_in, 1), jnp.float32)
            p['bd'] = 0.1 * jax.random.normal(ks[7], (nhid,), jnp.float32)
        else:              # later levels: identity residual
            p['wd'] = None
            p['bd'] = None
        blocks.append(p)
        n_in = nhid

    key, kx = jax.random.split(key)
    x = jax.random.normal(kx, (N, C_in, L), jnp.float32)   # PyTorch NCL input to the TCN

    out = temporal_conv_net(x, blocks, kernel_size=K)
    out = jax.block_until_ready(out)

    ref = reference_tcn(x, blocks, kernel_size=K)
    assert out.shape == (N, nhid, L), out.shape
    err = float(jnp.max(jnp.abs(out - ref)))
    # bf16 MXU operands (f32 accumulation) vs. a Precision.HIGHEST f32 reference.
    assert err < 5e-2, err

    print("KERNEL_OK")
</pallas_src>

<mosaic_0001>
module attributes {stable_mosaic.version = 11 : i64} {
  func.func @tcn_kernel(%arg0: i32, %arg1: memref<32x1xi32, #tpu.memory_space<vmem>>, %arg2: memref<32x128xf32, #tpu.memory_space<vmem>>, %arg3: memref<384x256xbf16, #tpu.memory_space<vmem>>, %arg4: memref<1x256xf32, #tpu.memory_space<vmem>>, %arg5: memref<384x128xbf16, #tpu.memory_space<vmem>>, %arg6: memref<1x128xf32, #tpu.memory_space<vmem>>, %arg7: memref<384x128xbf16, #tpu.memory_space<vmem>>, %arg8: memref<1x128xf32, #tpu.memory_space<vmem>>, %arg9: memref<384x128xbf16, #tpu.memory_space<vmem>>, %arg10: memref<1x128xf32, #tpu.memory_space<vmem>>, %arg11: memref<32x128xf32, #tpu.memory_space<vmem>>) attributes {dimension_semantics = [#tpu.dimension_semantics<parallel>], iteration_bounds = array<i64: 2>, scalar_prefetch = 0 : i64, scratch_operands = 0 : i64, tpu.core_type = #tpu.core_type<tc>, window_params = [{pipeline_mode = #tpu.pipeline_mode<synchronous>, transform_indices = @transform_0, window_bounds = array<i64: 32, 1>}, {transform_indices = @transform_1, window_bounds = array<i64: 32, 128>}, {pipeline_mode = #tpu.pipeline_mode<synchronous>, transform_indices = @transform_2, window_bounds = array<i64: 384, 256>}, {pipeline_mode = #tpu.pipeline_mode<synchronous>, transform_indices = @transform_3, window_bounds = array<i64: 1, 256>}, {pipeline_mode = #tpu.pipeline_mode<synchronous>, transform_indices = @transform_4, window_bounds = array<i64: 384, 128>}, {pipeline_mode = #tpu.pipeline_mode<synchronous>, transform_indices = @transform_5, window_bounds = array<i64: 1, 128>}, {pipeline_mode = #tpu.pipeline_mode<synchronous>, transform_indices = @transform_6, window_bounds = array<i64: 384, 128>}, {pipeline_mode = #tpu.pipeline_mode<synchronous>, transform_indices = @transform_7, window_bounds = array<i64: 1, 128>}, {pipeline_mode = #tpu.pipeline_mode<synchronous>, transform_indices = @transform_8, window_bounds = array<i64: 384, 128>}, {pipeline_mode = #tpu.pipeline_mode<synchronous>, transform_indices = @transform_9, window_bounds = array<i64: 1, 128>}, {transform_indices = @transform_10, window_bounds = array<i64: 32, 128>}]} {
    %c0 = arith.constant 0 : index
    %c0_0 = arith.constant 0 : index
    %0 = vector.load %arg1[%c0, %c0_0] : memref<32x1xi32, #tpu.memory_space<vmem>>, vector<32x1xi32>
    %c0_1 = arith.constant 0 : index
    %c0_2 = arith.constant 0 : index
    %1 = vector.load %arg2[%c0_1, %c0_2] : memref<32x128xf32, #tpu.memory_space<vmem>>, vector<32x128xf32>
    %c0_3 = arith.constant 0 : index
    %c0_4 = arith.constant 0 : index
    %2 = vector.load %arg3[%c0_3, %c0_4] : memref<384x256xbf16, #tpu.memory_space<vmem>>, vector<384x256xbf16>
    %c0_5 = arith.constant 0 : index
    %c0_6 = arith.constant 0 : index
    %3 = vector.load %arg4[%c0_5, %c0_6] : memref<1x256xf32, #tpu.memory_space<vmem>>, vector<1x256xf32>
    %c0_7 = arith.constant 0 : index
    %c0_8 = arith.constant 0 : index
    %4 = vector.load %arg5[%c0_7, %c0_8] : memref<384x128xbf16, #tpu.memory_space<vmem>>, vector<384x128xbf16>
    %c0_9 = arith.constant 0 : index
    %c0_10 = arith.constant 0 : index
    %5 = vector.load %arg6[%c0_9, %c0_10] : memref<1x128xf32, #tpu.memory_space<vmem>>, vector<1x128xf32>
    %c2_i32 = arith.constant 2 : i32
    %6 = vector.broadcast %c2_i32 : i32 to vector<32x1xi32>
    %7 = arith.cmpi slt, %0, %6 : vector<32x1xi32>
    %c2_i32_11 = arith.constant 2 : i32
    %8 = tpu.dynamic_rotate %1 by %c2_i32_11 dim 0 : vector<32x128xf32>, i32 -> vector<32x128xf32>
    %cst = arith.constant 0.000000e+00 : f32
    %9 = vector.shape_cast %7 : vector<32x1xi1> to vector<32x1xi1>
    %10 = vector.broadcast %9 : vector<32x1xi1> to vector<32x128xi1>
    %11 = vector.broadcast %cst : f32 to vector<32x128xf32>
    %12 = arith.select %10, %11, %8 : vector<32x128xi1>, vector<32x128xf32>
    %13 = arith.truncf %12 : vector<32x128xf32> to vector<32x128xbf16>
    %c1_i32 = arith.constant 1 : i32
    %14 = vector.broadcast %c1_i32 : i32 to vector<32x1xi32>
    %15 = arith.cmpi slt, %0, %14 : vector<32x1xi32>
    %c1_i32_12 = arith.constant 1 : i32
    %16 = tpu.dynamic_rotate %1 by %c1_i32_12 dim 0 : vector<32x128xf32>, i32 -> vector<32x128xf32>
    %cst_13 = arith.constant 0.000000e+00 : f32
    %17 = vector.shape_cast %15 : vector<32x1xi1> to vector<32x1xi1>
    %18 = vector.broadcast %17 : vector<32x1xi1> to vector<32x128xi1>
    %19 = vector.broadcast %cst_13 : f32 to vector<32x128xf32>
    %20 = arith.select %18, %19, %16 : vector<32x128xi1>, vector<32x128xf32>
    %21 = arith.truncf %20 : vector<32x128xf32> to vector<32x128xbf16>
    %22 = arith.truncf %1 : vector<32x128xf32> to vector<32x128xbf16>
    %23 = tpu.concatenate %13, %21, %22 in 1 : vector<32x128xbf16>, vector<32x128xbf16>, vector<32x128xbf16> -> vector<32x384xbf16>
    %cst_14 = arith.constant dense<0.000000e+00> : vector<32x256xf32>
    %24 = tpu.matmul %23, %2, %cst_14 {dimension_numbers = #tpu.dot_dimension_numbers<[1], [0], [0], [1], [0, 0, 1, 1], [], []>} : vector<32x384xbf16>, vector<384x256xbf16>, vector<32x256xf32> -> vector<32x256xf32>
    %25 = vector.broadcast %3 : vector<1x256xf32> to vector<32x256xf32>
    %26 = arith.addf %24, %25 : vector<32x256xf32>
    %27 = vector.extract_strided_slice %26 {offsets = [0, 0], sizes = [32, 128], strides = [1, 1]} : vector<32x256xf32> to vector<32x128xf32>
    %cst_15 = arith.constant 0.000000e+00 : f32
    %28 = vector.broadcast %cst_15 : f32 to vector<32x128xf32>
    %29 = arith.maximumf %27, %28 : vector<32x128xf32>
    %30 = vector.extract_strided_slice %26 {offsets = [0, 128], sizes = [32, 128], strides = [1, 1]} : vector<32x256xf32> to vector<32x128xf32>
    %c2_i32_16 = arith.constant 2 : i32
    %31 = vector.broadcast %c2_i32_16 : i32 to vector<32x1xi32>
    %32 = arith.cmpi slt, %0, %31 : vector<32x1xi32>
    %c2_i32_17 = arith.constant 2 : i32
    %33 = tpu.dynamic_rotate %29 by %c2_i32_17 dim 0 : vector<32x128xf32>, i32 -> vector<32x128xf32>
    %cst_18 = arith.constant 0.000000e+00 : f32
    %34 = vector.shape_cast %32 : vector<32x1xi1> to vector<32x1xi1>
    %35 = vector.broadcast %34 : vector<32x1xi1> to vector<32x128xi1>
    %36 = vector.broadcast %cst_18 : f32 to vector<32x128xf32>
    %37 = arith.select %35, %36, %33 : vector<32x128xi1>, vector<32x128xf32>
    %38 = arith.truncf %37 : vector<32x128xf32> to vector<32x128xbf16>
    %c1_i32_19 = arith.constant 1 : i32
    %39 = vector.broadcast %c1_i32_19 : i32 to vector<32x1xi32>
    %40 = arith.cmpi slt, %0, %39 : vector<32x1xi32>
    %c1_i32_20 = arith.constant 1 : i32
    %41 = tpu.dynamic_rotate %29 by %c1_i32_20 dim 0 : vector<32x128xf32>, i32 -> vector<32x128xf32>
    %cst_21 = arith.constant 0.000000e+00 : f32
    %42 = vector.shape_cast %40 : vector<32x1xi1> to vector<32x1xi1>
    %43 = vector.broadcast %42 : vector<32x1xi1> to vector<32x128xi1>
    %44 = vector.broadcast %cst_21 : f32 to vector<32x128xf32>
    %45 = arith.select %43, %44, %41 : vector<32x128xi1>, vector<32x128xf32>
    %46 = arith.truncf %45 : vector<32x128xf32> to vector<32x128xbf16>
    %47 = arith.truncf %29 : vector<32x128xf32> to vector<32x128xbf16>
    %48 = tpu.concatenate %38, %46, %47 in 1 : vector<32x128xbf16>, vector<32x128xbf16>, vector<32x128xbf16> -> vector<32x384xbf16>
    %cst_22 = arith.constant dense<0.000000e+00> : vector<32x128xf32>
    %49 = tpu.matmul %48, %4, %cst_22 {dimension_numbers = #tpu.dot_dimension_numbers<[1], [0], [0], [1], [0, 0, 1, 1], [], []>} : vector<32x384xbf16>, vector<384x128xbf16>, vector<32x128xf32> -> vector<32x128xf32>
    %50 = vector.broadcast %5 : vector<1x128xf32> to vector<32x128xf32>
    %51 = arith.addf %49, %50 : vector<32x128xf32>
    %cst_23 = arith.constant 0.000000e+00 : f32
    %52 = vector.broadcast %cst_23 : f32 to vector<32x128xf32>
    %53 = arith.maximumf %51, %52 : vector<32x128xf32>
    %54 = arith.addf %53, %30 : vector<32x128xf32>
    %cst_24 = arith.constant 0.000000e+00 : f32
    %55 = vector.broadcast %cst_24 : f32 to vector<32x128xf32>
    %56 = arith.maximumf %54, %55 : vector<32x128xf32>
    %c0_25 = arith.constant 0 : index
    %c0_26 = arith.constant 0 : index
    %57 = vector.load %arg7[%c0_25, %c0_26] : memref<384x128xbf16, #tpu.memory_space<vmem>>, vector<384x128xbf16>
    %c0_27 = arith.constant 0 : index
    %c0_28 = arith.constant 0 : index
    %58 = vector.load %arg8[%c0_27, %c0_28] : memref<1x128xf32, #tpu.memory_space<vmem>>, vector<1x128xf32>
    %c0_29 = arith.constant 0 : index
    %c0_30 = arith.constant 0 : index
    %59 = vector.load %arg9[%c0_29, %c0_30] : memref<384x128xbf16, #tpu.memory_space<vmem>>, vector<384x128xbf16>
    %c0_31 = arith.constant 0 : index
    %c0_32 = arith.constant 0 : index
    %60 = vector.load %arg10[%c0_31, %c0_32] : memref<1x128xf32, #tpu.memory_space<vmem>>, vector<1x128xf32>
    %c4_i32 = arith.constant 4 : i32
    %61 = vector.broadcast %c4_i32 : i32 to vector<32x1xi32>
    %62 = arith.cmpi slt, %0, %61 : vector<32x1xi32>
    %c4_i32_33 = arith.constant 4 : i32
    %63 = tpu.dynamic_rotate %56 by %c4_i32_33 dim 0 : vector<32x128xf32>, i32 -> vector<32x128xf32>
    %cst_34 = arith.constant 0.000000e+00 : f32
    %64 = vector.shape_cast %62 : vector<32x1xi1> to vector<32x1xi1>
    %65 = vector.broadcast %64 : vector<32x1xi1> to vector<32x128xi1>
    %66 = vector.broadcast %cst_34 : f32 to vector<32x128xf32>
    %67 = arith.select %65, %66, %63 : vector<32x128xi1>, vector<32x128xf32>
    %68 = arith.truncf %67 : vector<32x128xf32> to vector<32x128xbf16>
    %c2_i32_35 = arith.constant 2 : i32
    %69 = vector.broadcast %c2_i32_35 : i32 to vector<32x1xi32>
    %70 = arith.cmpi slt, %0, %69 : vector<32x1xi32>
    %c2_i32_36 = arith.constant 2 : i32
    %71 = tpu.dynamic_rotate %56 by %c2_i32_36 dim 0 : vector<32x128xf32>, i32 -> vector<32x128xf32>
    %cst_37 = arith.constant 0.000000e+00 : f32
    %72 = vector.shape_cast %70 : vector<32x1xi1> to vector<32x1xi1>
    %73 = vector.broadcast %72 : vector<32x1xi1> to vector<32x128xi1>
    %74 = vector.broadcast %cst_37 : f32 to vector<32x128xf32>
    %75 = arith.select %73, %74, %71 : vector<32x128xi1>, vector<32x128xf32>
    %76 = arith.truncf %75 : vector<32x128xf32> to vector<32x128xbf16>
    %77 = arith.truncf %56 : vector<32x128xf32> to vector<32x128xbf16>
    %78 = tpu.concatenate %68, %76, %77 in 1 : vector<32x128xbf16>, vector<32x128xbf16>, vector<32x128xbf16> -> vector<32x384xbf16>
    %cst_38 = arith.constant dense<0.000000e+00> : vector<32x128xf32>
    %79 = tpu.matmul %78, %57, %cst_38 {dimension_numbers = #tpu.dot_dimension_numbers<[1], [0], [0], [1], [0, 0, 1, 1], [], []>} : vector<32x384xbf16>, vector<384x128xbf16>, vector<32x128xf32> -> vector<32x128xf32>
    %80 = vector.broadcast %58 : vector<1x128xf32> to vector<32x128xf32>
    %81 = arith.addf %79, %80 : vector<32x128xf32>
    %cst_39 = arith.constant 0.000000e+00 : f32
    %82 = vector.broadcast %cst_39 : f32 to vector<32x128xf32>
    %83 = arith.maximumf %81, %82 : vector<32x128xf32>
    %c4_i32_40 = arith.constant 4 : i32
    %84 = vector.broadcast %c4_i32_40 : i32 to vector<32x1xi32>
    %85 = arith.cmpi slt, %0, %84 : vector<32x1xi32>
    %c4_i32_41 = arith.constant 4 : i32
    %86 = tpu.dynamic_rotate %83 by %c4_i32_41 dim 0 : vector<32x128xf32>, i32 -> vector<32x128xf32>
    %cst_42 = arith.constant 0.000000e+00 : f32
    %87 = vector.shape_cast %85 : vector<32x1xi1> to vector<32x1xi1>
    %88 = vector.broadcast %87 : vector<32x1xi1> to vector<32x128xi1>
    %89 = vector.broadcast %cst_42 : f32 to vector<32x128xf32>
    %90 = arith.select %88, %89, %86 : vector<32x128xi1>, vector<32x128xf32>
    %91 = arith.truncf %90 : vector<32x128xf32> to vector<32x128xbf16>
    %c2_i32_43 = arith.constant 2 : i32
    %92 = vector.broadcast %c2_i32_43 : i32 to vector<32x1xi32>
    %93 = arith.cmpi slt, %0, %92 : vector<32x1xi32>
    %c2_i32_44 = arith.constant 2 : i32
    %94 = tpu.dynamic_rotate %83 by %c2_i32_44 dim 0 : vector<32x128xf32>, i32 -> vector<32x128xf32>
    %cst_45 = arith.constant 0.000000e+00 : f32
    %95 = vector.shape_cast %93 : vector<32x1xi1> to vector<32x1xi1>
    %96 = vector.broadcast %95 : vector<32x1xi1> to vector<32x128xi1>
    %97 = vector.broadcast %cst_45 : f32 to vector<32x128xf32>
    %98 = arith.select %96, %97, %94 : vector<32x128xi1>, vector<32x128xf32>
    %99 = arith.truncf %98 : vector<32x128xf32> to vector<32x128xbf16>
    %100 = arith.truncf %83 : vector<32x128xf32> to vector<32x128xbf16>
    %101 = tpu.concatenate %91, %99, %100 in 1 : vector<32x128xbf16>, vector<32x128xbf16>, vector<32x128xbf16> -> vector<32x384xbf16>
    %cst_46 = arith.constant dense<0.000000e+00> : vector<32x128xf32>
    %102 = tpu.matmul %101, %59, %cst_46 {dimension_numbers = #tpu.dot_dimension_numbers<[1], [0], [0], [1], [0, 0, 1, 1], [], []>} : vector<32x384xbf16>, vector<384x128xbf16>, vector<32x128xf32> -> vector<32x128xf32>
    %103 = vector.broadcast %60 : vector<1x128xf32> to vector<32x128xf32>
    %104 = arith.addf %102, %103 : vector<32x128xf32>
    %cst_47 = arith.constant 0.000000e+00 : f32
    %105 = vector.broadcast %cst_47 : f32 to vector<32x128xf32>
    %106 = arith.maximumf %104, %105 : vector<32x128xf32>
    %107 = arith.addf %106, %56 : vector<32x128xf32>
    %cst_48 = arith.constant 0.000000e+00 : f32
    %108 = vector.broadcast %cst_48 : f32 to vector<32x128xf32>
    %109 = arith.maximumf %107, %108 : vector<32x128xf32>
    %c0_49 = arith.constant 0 : index
    %c0_50 = arith.constant 0 : index
    %110 = vector.load %arg11[%c0_49, %c0_50] : memref<32x128xf32, #tpu.memory_space<vmem>>, vector<32x128xf32>
    tpu.vector_store %arg11[%c0_49, %c0_50], %109 {strides = array<i32>} : memref<32x128xf32, #tpu.memory_space<vmem>>, vector<32x128xf32>,
    return
  }
  func.func @transform_0(%arg0: i32) -> (i32, i32) {
    %c0_i32 = arith.constant 0 : i32
    %c0_i32_0 = arith.constant 0 : i32
    %c0_i32_1 = arith.constant 0 : i32
    return %c0_i32, %c0_i32_0 : i32, i32
  }
  func.func @transform_1(%arg0: i32) -> (i32, i32) {
    %c0_i32 = arith.constant 0 : i32
    %c0_i32_0 = arith.constant 0 : i32
    return %arg0, %c0_i32 : i32, i32
  }
  func.func @transform_2(%arg0: i32) -> (i32, i32) {
    %c0_i32 = arith.constant 0 : i32
    %c0_i32_0 = arith.constant 0 : i32
    %c0_i32_1 = arith.constant 0 : i32
    return %c0_i32, %c0_i32_0 : i32, i32
  }
  func.func @transform_3(%arg0: i32) -> (i32, i32) {
    %c0_i32 = arith.constant 0 : i32
    %c0_i32_0 = arith.constant 0 : i32
    %c0_i32_1 = arith.constant 0 : i32
    return %c0_i32, %c0_i32_0 : i32, i32
  }
  func.func @transform_4(%arg0: i32) -> (i32, i32) {
    %c0_i32 = arith.constant 0 : i32
    %c0_i32_0 = arith.constant 0 : i32
    %c0_i32_1 = arith.constant 0 : i32
    return %c0_i32, %c0_i32_0 : i32, i32
  }
  func.func @transform_5(%arg0: i32) -> (i32, i32) {
    %c0_i32 = arith.constant 0 : i32
    %c0_i32_0 = arith.constant 0 : i32
    %c0_i32_1 = arith.constant 0 : i32
    return %c0_i32, %c0_i32_0 : i32, i32
  }
  func.func @transform_6(%arg0: i32) -> (i32, i32) {
    %c0_i32 = arith.constant 0 : i32
    %c0_i32_0 = arith.constant 0 : i32
    %c0_i32_1 = arith.constant 0 : i32
    return %c0_i32, %c0_i32_0 : i32, i32
  }
  func.func @transform_7(%arg0: i32) -> (i32, i32) {
    %c0_i32 = arith.constant 0 : i32
    %c0_i32_0 = arith.constant 0 : i32
    %c0_i32_1 = arith.constant 0 : i32
    return %c0_i32, %c0_i32_0 : i32, i32
  }
  func.func @transform_8(%arg0: i32) -> (i32, i32) {
    %c0_i32 = arith.constant 0 : i32
    %c0_i32_0 = arith.constant 0 : i32
    %c0_i32_1 = arith.constant 0 : i32
    return %c0_i32, %c0_i32_0 : i32, i32
  }
  func.func @transform_9(%arg0: i32) -> (i32, i32) {
    %c0_i32 = arith.constant 0 : i32
    %c0_i32_0 = arith.constant 0 : i32
    %c0_i32_1 = arith.constant 0 : i32
    return %c0_i32, %c0_i32_0 : i32, i32
  }
  func.func @transform_10(%arg0: i32) -> (i32, i32) {
    %c0_i32 = arith.constant 0 : i32
    %c0_i32_0 = arith.constant 0 : i32
    return %arg0, %c0_i32 : i32, i32
  }
}

</mosaic_0001>

<bundles_post_ra>
// kernel: tpu_custom_call.1
= control target key start
LH: loop header
LB: loop body
LE: loop exit
PB: predicated region body
PF: predicated region fallthrough
CT: control target
= control target key end

     0   :  { %s3686_s0 = inlined_call_operand.vmem [shape: s32[32,1], index: 0, kind: input, shape index: {}]   ;;  %s3687_s1 = inlined_call_operand.hbm [shape: f32[64,128], index: 1, kind: input, shape index: {}]   ;;  %s3688_s2 = inlined_call_operand.hbm [shape: bf16[384,256], index: 2, kind: input, shape index: {}]   ;;  %s3689_s3 = inlined_call_operand.vmem [shape: f32[1,256], index: 3, kind: input, shape index: {}]   ;;  %s3690_s4 = inlined_call_operand.hbm [shape: bf16[384,128], index: 4, kind: input, shape index: {}]   ;;  %s3691_s5 = inlined_call_operand.vmem [shape: f32[1,128], index: 5, kind: input, shape index: {}]   ;;  %s3692_s6 = inlined_call_operand.hbm [shape: bf16[384,128], index: 6, kind: input, shape index: {}]   ;;  %s3693_s7 = inlined_call_operand.vmem [shape: f32[1,128], index: 7, kind: input, shape index: {}]   ;;  %s3694_s8 = inlined_call_operand.hbm [shape: bf16[384,128], index: 8, kind: input, shape index: {}]   ;;  %s3695_s9 = inlined_call_operand.vmem [shape: f32[1,128], index: 9, kind: input, shape index: {}]   ;;  %s3696_s10 = inlined_call_operand.hbm [shape: f32[64,128], index: 10, kind: output, shape index: {}]  }
   0x1   :  { %3699 = sst [smem:[#allocation16_spill]] %s3688_s2 }
   0x2   :  { %3700 = sst [smem:[#allocation17_spill]] %s3690_s4 }
   0x3   :  { %3701 = sst [smem:[#allocation18_spill]] %s3692_s6 }
   0x4   :  { %3702 = sst [smem:[#allocation19_spill]] %s3694_s8 }
   0x5   :  { %15 = vsyncpa [#allocation3], 0 }
   0x6   :  { %17 = vsyncpa [#allocation3 + $0x1], 0 }
   0x7   :  { %18 = vsyncpa [#allocation6], 0 }
   0x8   :  { %19 = vsyncpa [#allocation9], 0 }
   0x9   :  { %20 = vsyncpa [#allocation4], 0 }
   0xa   :  { %22 = vsyncpa [#allocation4 + $0x1], 0  ;;  %s3175_s13 = smov 0   ;;  %s3177_s14 = smov 0  }
   0xb   :  { %s3179_s15 = smov 0   ;;  %s3181_s16 = smov 0  }
   0xc LB: > { %s3196_s17 = sadd.s32 4294967295, %s3107_s16   ;;  %s2151_s18 = sadd.s32 4294967294, %s3107_s16   ;;  %s3107_s16 = sphi %s3181_s16, %s3719_s16   ;;  %s3103_s15 = sphi %s3179_s15, %s3718_s15   ;;  %s3099_s14 = sphi %s3177_s14, %s3717_s14   ;;  %s3095_s13 = sphi %s3175_s13, %s3716_s13  }
   0xd   : > { %p69_p0 = scmp.ne.s32.totalorder %s3099_s14, %s3095_s13  ;;  %p70_p1 = scmp.eq.s32.totalorder %s3196_s17, 0 }
   0xe   : > { %p261_p2 = scmp.eq.s32.totalorder %s3196_s17, 1  ;;  %p267_p3 = scmp.eq.s32.totalorder %s2151_s18, 1 }
   0xf   : > { %p3205_p4 = por %p70_p1, %p69_p0  ;;  %p2152_p5 = scmp.ge.s32.totalorder %s3107_s16, 1 }
  0x10   : > { %p3210_p6 = por %p267_p3, %p69_p0  ;;  %p274_p7 = scmp.lt.s32.totalorder %s3107_s16, 3 }
  0x11   : > { %s3705_s2 = sld [smem:[#allocation16_spill]]  ;;  %s3109_s25 = smov [#allocation5]  }
  0x12   : > { %p3218_p8 = pnand %p2152_p5, %p274_p7  ;;  %s290_s26 = sshll.u32 %s3109_s25, 4  ;;  %s291_s26 = int_to_ptr.vmem [resolvable:$true] %s290_s26 }
  0x13   : > { %s3708_s6 = sld [smem:[#allocation18_spill]]  ;;  %s3697_s11 = smov 128  }
  0x14   : > { %p2803_p9 = pneg %p3218_p8  ;;  %s3698_s12 = smov 8  }
  0x15   : > { %s3112_s18 = smov [#allocation8]   ;;  %s3709_s4 = sld [smem:[#allocation17_spill]] }
  0x16   : > { %p3226_p10 = pnand %p2803_p9, %p70_p1  ;;  %s324_s21 = sshll.u32 %s3112_s18, 4  ;;  %s325_s21 = int_to_ptr.vmem [resolvable:$true] %s324_s21 }
  0x17   : > { %s288_s23 = sshll.u32 %s3705_s2, 4  ;;  %s3113_s28 = smov 64   ;;  %s289_s23 = int_to_ptr.hbm [resolvable:$true] %s288_s23 }
  0x18   : > { %2806 = dma.hbm_to_vmem [thread:$0]  (!%p3226_p10), %s289_s23, 6144, %s291_s26, [#allocation6], %s3697_s11, %s3697_s11, %s3698_s12  }
  0x19   : > { %s322_s30 = sshll.u32 %s3708_s6, 4  ;;  %s3114_s29 = smov 4   ;;  %s323_s30 = int_to_ptr.hbm [resolvable:$true] %s322_s30 }
  0x1a   : > { %2812 = dma.hbm_to_vmem [thread:$0]  (!%p3226_p10), %s323_s30, 3072, %s325_s21, [#allocation9], %s3113_s28, %s3113_s28, %s3114_s29  }
  0x1b   : > { %s305_s2 = sshll.u32 %s3709_s4, 4  ;;  %s3710_s8 = sld [smem:[#allocation19_spill]]  ;;  %s306_s2 = int_to_ptr.hbm [resolvable:$true] %s305_s2 }
  0x1c   : > { %s3115_s22 = smov [#allocation7]   ;;  %s3116_s11 = smov [#allocation10]  }
  0x1d   : > { %s307_s25 = sshll.u32 %s3115_s22, 4  ;;  %s341_s12 = sshll.u32 %s3116_s11, 4  ;;  %s308_s25 = int_to_ptr.vmem [resolvable:$true] %s307_s25  ;;  %s342_s12 = int_to_ptr.vmem [resolvable:$true] %s341_s12 }
  0x1e   : > { %2809 = dma.hbm_to_vmem [thread:$0]  (!%p3226_p10), %s306_s2, 3072, %s308_s25, [#allocation6], %s3113_s28, %s3113_s28, %s3114_s29  }
  0x1f   : > { %s3252_s30 = sadd.s32 1, %s3107_s16   ;;  %s56_s21 = sadd.s32 1, %s3103_s15 }
  0x20   : > { %s53_s23 = ssub.s32 %s3107_s16, %s3252_s30  ;;  %p63_p12 = scmp.ne.s32.totalorder %s3103_s15, %s3099_s14 }
  0x21   : > { %s339_s18 = sshll.u32 %s3710_s8, 4  ;;  %p54_p13 = scmp.eq.s32.totalorder %s53_s23, 0  ;;  %s340_s18 = int_to_ptr.hbm [resolvable:$true] %s339_s18 }
  0x22   : > { %2815 = dma.hbm_to_vmem [thread:$0]  (!%p3226_p10), %s340_s18, 3072, %s342_s12, [#allocation9], %s3113_s28, %s3113_s28, %s3114_s29  }
  0x23   : > { %p64_p0 = scmp.eq.s32.totalorder %s3107_s16, 0  ;;  %p3262_p3 = por %p261_p2, %p63_p12 }
  0x24   : > { %p2828_p5 = scmp.lt.s32.totalorder %s3107_s16, 2  ;;  %s358_s11 = sand.u32 1, %s3103_s15  }
  0x25   : > { %s3268_s2 = scalar_select %p54_p13, %s3103_s15, %s56_s21  }
  0x26   : > { %p65_p7 = por %p64_p0, %p63_p12  ;;  %s2158_s27 = sshll.u32 %s358_s11, 5 }
  0x27   : > { %s2653_s12 = sshll.u32 %s3107_s16, 5  ;;  %s362_s22 = scalar_lea.vmem [#allocation2], %s2158_s27 }
  0x28   : > { %s367_s18 = scalar_lea.hbm %s3687_s1, %s2653_s12  ;;  %s370_s25 = sshll.u32 %s362_s22, 4  ;;  %s371_s25 = int_to_ptr.vmem [resolvable:$true] %s370_s25 }
  0x29   : > { %s368_s23 = sshll.u32 %s367_s18, 4  ;;  %p3275_p2 = pnand %p2828_p5, %p65_p7  ;;  %s369_s23 = int_to_ptr.hbm [resolvable:$true] %s368_s23 }
  0x2a   : > { %s359_s21 = scalar_lea.sflag [#allocation3], %s358_s11  ;;  %s3003_s6 = sshra.s32 %s369_s23, 4  ;;  %s3004_s6 = int_to_ptr.hbm [resolvable:$true] %s3003_s6 }
  0x2b   : > { %s3005_s8 = scalar_lea.hbm %s3004_s6, 32  ;;  %p3007_p10 = pneg %p3275_p2 }
  0x2c   : > { %p3006_p9 = scmp.ne.s32.totalorder %s3004_s6, %s3005_s8  ;;  %s3010_s28 = scalar_lea.hbm %s3687_s1, 64 }
  0x2d   : > { %p3011_p0 = scmp.lt.s32.totalorder %s3004_s6, %s3687_s1  ;;  %p3012_p5 = scmp.lt.s32.totalorder %s3010_s28, %s3005_s8 }
  0x2e   : > { %p3008_p12 = pnand %p3007_p10, %p3006_p9 }
  0x2f   : > { %p3013_p7 = por %p3012_p5, %p3011_p0 }
  0x30   : > { %p3009_p13 = pneg %p3008_p12 }
  0x32   : > { %p3014_p11 = pnand %p3013_p7, %p3009_p13 }
  0x34   : > { %3017 = shalt.err (!%p3014_p11)
}
  0x35   : > { %s3713_s11 = smov 8   ;;  %s3714_s22 = smov 128  }
  0x36   : > { %2819 = dma.hbm_to_vmem [thread:$0]  (!%p3275_p2), %s369_s23, 512, %s371_s25, %s359_s21, %s3714_s22, %s3714_s22, %s3713_s11  }
  0x37   : > { %382 = sbr.rel (%p3218_p8) target bundleno = 882 (0x372), region = 60  ;;  %s3295_s12 = sand.u32 (!%p3218_p8), 1, %s3099_s14  }
  0x38   : > { %s2162_s6 = sshll.u32 (!%p3218_p8), %s3295_s12, 5  ;;  %s385_s8 = scalar_lea.sflag (!%p3218_p8), [#allocation3], %s3295_s12 }
  0x39   : > { %s3301_s27 = scalar_lea.vmem (!%p3218_p8), [#allocation2], %s2162_s6 }
  0x3c   : > { %3078 = dma.done.wait (%p3205_p4), %s385_s8, 512  }
  0x3d   : > { %3080 = vsyncadd (%p3205_p4), %s385_s8, 4294966784 }
  0x3e   : > { %3082 = dma.done.wait (%p70_p1), [#allocation6], 9216  }
  0x3f   : > { %3084 = vsyncadd (%p70_p1), [#allocation6], 4294958080 }
  0x40   : > { %3086 = dma.done.wait (%p70_p1), [#allocation9], 6144  }
  0x41   : > { %3088 = vsyncadd (%p70_p1), [#allocation9], 4294961152  ;;  %v3117_v0 = vmov 0   ;;  %v3321_v1 = vld [vmem:[%s3686_s0] sm:$0xff]  ;;  %v3326_v2 = vld [vmem:[%s3686_s0 + $0x8] sm:$0xff]  ;;  %s3643_s25 = scalar_lea.vmem [#allocation11], %s2162_s6 }
  0x42   : > { %2878 = vset.pattern.permute.xlu1 %v3117_v0  ;;  %2877 = vset.pattern.permute.xlu0 %v3117_v0  ;;  %v3331_v3 = vld [vmem:[%s3686_s0 + $0x10] sm:$0xff]  ;;  %vm597_vm0 = vcmp.lt.s32.totalorder %v3321_v1, 1  ;;  %vm554_vm1 = vcmp.lt.s32.totalorder %v3321_v1, 2  ;;  %vm598_vm2 = vcmp.lt.s32.totalorder %v3326_v2, 1  ;;  %vm555_vm3 = vcmp.lt.s32.totalorder %v3326_v2, 2  ;;  %v3343_v6 = vld [vmem:[%s3686_s0 + $0x18] sm:$0xff] }
  0x43   : > { %2879 = vset.pattern.permute.xlu2 %v3117_v0  ;;  %v610_v4 = vsel %vm597_vm0, 1, %v3117_v0  ;;  %v569_v5 = vsel %vm554_vm1, 1, %v3117_v0  ;;  %vm556_vm4 = vcmp.lt.s32.totalorder %v3331_v3, 2  ;;  %vm557_vm5 = vcmp.lt.s32.totalorder %v3343_v6, 2  ;;  %v2354_v8 = vld [vmem:[#allocation5 + $0x170] sm:$0xf] }
  0x44   : > { %615 = vperm.xlu1 %2878, %v610_v4   ;;  %574 = vperm.xlu0 %2877, %v569_v5   ;;  %v571_v7 = vsel %vm556_vm4, 1, %v3117_v0  ;;  %v2701_v9 = vld [vmem:[#allocation5 + $0x174] sm:$0xf0]  ;;  %v611_v10 = vsel %vm598_vm2, 1, %v3117_v0  ;;  %v2346_v11 = vld [vmem:[#allocation5 + $0x160] sm:$0xf] }
  0x45   : > { %580 = vperm.xlu2 %2879, %v571_v7   ;;  %v2699_v12 = vld [vmem:[#allocation5 + $0x164] sm:$0xf0]  ;;  %v570_v13 = vsel %vm555_vm3, 1, %v3117_v0  ;;  %v572_v14 = vsel %vm557_vm5, 1, %v3117_v0  ;;  %v2355_v15 = vor.u32 %v2701_v9, %v2354_v8  ;;  %v2226_v16 = vld [vmem:[#allocation5 + $0x70] sm:$0xf] }
  0x46   : > { %v2669_v17 = vld [vmem:[#allocation5 + $0x74] sm:$0xf0]  ;;  %v2290_v19 = vld [vmem:[#allocation5 + $0xf0] sm:$0xf]  ;;  %v2668_v21 = vld [vmem:[#allocation5 + $0x74] sm:$0xf]  ;;  %v2347_v22 = vor.u32 %v2699_v12, %v2346_v11 }
  0x47   : > { %v2227_v18 = vor.u32 %v2669_v17, %v2226_v16  ;;  %v2685_v20 = vld [vmem:[#allocation5 + $0xf4] sm:$0xf0]  ;;  %961 = vmatpush.bf16.msra.mxu2 %v2355_v15  ;;  %v2338_v23 = vld [vmem:[#allocation5 + $0x150] sm:$0xf]  ;;  %v2228_v26 = vld [vmem:[#allocation5 + $0x78] sm:$0xf0] }
  0x48   : > { %v2697_v24 = vld [vmem:[#allocation5 + $0x154] sm:$0xf0]  ;;  %v2291_v25 = vor.u32 %v2685_v20, %v2290_v19  ;;  %v2231_v27 = vor.u32 %v2668_v21, %v2228_v26  ;;  %v2218_v28 = vld [vmem:[#allocation5 + $0x60] sm:$0xf]  ;;  %v2667_v29 = vld [vmem:[#allocation5 + $0x64] sm:$0xf0] }
  0x49   : > { %923 = vmatpush.bf16.msra.mxu0 %v2227_v18  ;;  %v2282_v30 = vld [vmem:[#allocation5 + $0xe0] sm:$0xf]  ;;  %v2219_v31 = vor.u32 %v2667_v29, %v2218_v28  ;;  %v2683_v32 = vld [vmem:[#allocation5 + $0xe4] sm:$0xf0]  ;;  %v2666_v33 = vld [vmem:[#allocation5 + $0x64] sm:$0xf]  ;;  %v2339_v37 = vor.u32 %v2697_v24, %v2338_v23 }
  0x4a   : > { %v2220_v34 = vld [vmem:[#allocation5 + $0x68] sm:$0xf0]  ;;  %942 = vmatpush.bf16.msra.mxu1 %v2291_v25  ;;  %980 = vmatpush.bf16.msra.mxu3 %v2231_v27  ;;  %v2283_v35 = vor.u32 %v2683_v32, %v2282_v30  ;;  %vm600_vm6 = vcmp.lt.s32.totalorder %v3343_v6, 1  ;;  %vm599_vm7 = vcmp.lt.s32.totalorder %v3331_v3, 1  ;;  %v2330_v38 = vld [vmem:[#allocation5 + $0x140] sm:$0xf] }
  0x4b   : > { %v2223_v36 = vor.u32 %v2666_v33, %v2220_v34  ;;  %962 = vmatpush.bf16.msra.mxu2 %v2347_v22  ;;  %v2695_v39 = vld [vmem:[#allocation5 + $0x144] sm:$0xf0]  ;;  %vm1427_vm8 = vcmp.lt.s32.totalorder %v3321_v1, 4  ;;  %v613_v40 = vsel %vm600_vm6, 1, %v3117_v0  ;;  %v612_v41 = vsel %vm599_vm7, 1, %v3117_v0  ;;  %s2774_s6 = sshll.u32 %s3196_s17, 5 }
  0x4c   : > { %618 = vperm.xlu1 %2878, %v611_v10   ;;  %577 = vperm.xlu0 %2877, %v570_v13   ;;  %v2331_v42 = vor.u32 %v2695_v39, %v2330_v38  ;;  %v1440_v43 = vsel %vm1427_vm8, 1, %v3117_v0  ;;  %v2322_v44 = vld [vmem:[#allocation5 + $0x130] sm:$0xf]  ;;  %v2693_v45 = vld [vmem:[#allocation5 + $0x134] sm:$0xf0]  ;;  %vm1429_vm9 = vcmp.lt.s32.totalorder %v3331_v3, 4  ;;  %s2036_s28 = scalar_lea.hbm %s3696_s10, %s2774_s6 }
  0x4d   : > { %583 = vperm.xlu2 %2879, %v572_v14   ;;  %924 = vmatpush.bf16.msra.mxu0 %v2219_v31  ;;  %vm1428_vm10 = vcmp.lt.s32.totalorder %v3326_v2, 4  ;;  %v2323_v46 = vor.u32 %v2693_v45, %v2322_v44  ;;  %vm1430_vm11 = vcmp.lt.s32.totalorder %v3343_v6, 4  ;;  %v1442_v47 = vsel %vm1429_vm9, 1, %v3117_v0  ;;  %v2210_v50 = vld [vmem:[#allocation5 + $0x50] sm:$0xf]  ;;  %v3363_v10 = vld [vmem:[%s3301_s27] sm:$0xff] }
  0x4e   : > { %943 = vmatpush.bf16.msra.mxu1 %v2283_v35  ;;  %981 = vmatpush.bf16.msra.mxu3 %v2223_v36  ;;  %v1441_v48 = vsel %vm1428_vm10, 1, %v3117_v0  ;;  %v1443_v49 = vsel %vm1430_vm11, 1, %v3117_v0  ;;  %v2665_v51 = vld [vmem:[#allocation5 + $0x54] sm:$0xf0]  ;;  %v2274_v52 = vld [vmem:[#allocation5 + $0xd0] sm:$0xf]  ;;  %v638_v23 = vpack.c.bf16 %v3363_v10, %v3363_v10 }
  0x4f   : > { %963 = vmatpush.bf16.msra.mxu2 %v2339_v37  ;;  %v2211_v53 = vor.u32 %v2665_v51, %v2210_v50  ;;  %v2681_v54 = vld [vmem:[#allocation5 + $0xd4] sm:$0xf0]  ;;  %v2664_v55 = vld [vmem:[#allocation5 + $0x54] sm:$0xf]  ;;  %v2212_v56 = vld [vmem:[#allocation5 + $0x58] sm:$0xf0] }
  0x50   : > { %v2275_v57 = vor.u32 %v2681_v54, %v2274_v52  ;;  %v2215_v58 = vor.u32 %v2664_v55, %v2212_v56  ;;  %v2314_v59 = vld [vmem:[#allocation5 + $0x120] sm:$0xf]  ;;  %v2691_v60 = vld [vmem:[#allocation5 + $0x124] sm:$0xf0]  ;;  %v2662_v4 = vld [vmem:[#allocation5 + $0x44] sm:$0xf]  ;;  %v670_v29 = vunpack.c.l.b16 %v638_v23 }
  0x51   : > { %v2202_v61 = vld [vmem:[#allocation5 + $0x40] sm:$0xf]  ;;  %925 = vmatpush.bf16.msra.mxu0 %v2211_v53  ;;  %v2315_v62 = vor.u32 %v2691_v60, %v2314_v59  ;;  %v2663_v63 = vld [vmem:[#allocation5 + $0x44] sm:$0xf0]  ;;  %v2204_v5 = vld [vmem:[#allocation5 + $0x48] sm:$0xf0] }
  0x52   : > { %v2266_v1 = vld [vmem:[#allocation5 + $0xc0] sm:$0xf]  ;;  %v2679_v0 = vld [vmem:[#allocation5 + $0xc4] sm:$0xf0]  ;;  %944 = vmatpush.bf16.msra.mxu1 %v2275_v57  ;;  %982 = vmatpush.bf16.msra.mxu3 %v2215_v58  ;;  %v2203_v2 = vor.u32 %v2663_v63, %v2202_v61  ;;  %v2306_v6 = vld [vmem:[#allocation5 + $0x110] sm:$0xf]  ;;  %v2207_v7 = vor.u32 %v2662_v4, %v2204_v5 }
  0x53   : > { %964 = vmatpush.bf16.msra.mxu2 %v2331_v42  ;;  %v2267_v3 = vor.u32 %v2679_v0, %v2266_v1  ;;  %v2689_v8 = vld [vmem:[#allocation5 + $0x114] sm:$0xf0]  ;;  %v2194_v11 = vld [vmem:[#allocation5 + $0x30] sm:$0xf]  ;;  %v2660_v16 = vld [vmem:[#allocation5 + $0x34] sm:$0xf] }
  0x54   : > { %624 = vperm.xlu1 %2878, %v613_v40   ;;  %621 = vperm.xlu0 %2877, %v612_v41   ;;  %v2307_v9 = vor.u32 %v2689_v8, %v2306_v6  ;;  %v2661_v12 = vld [vmem:[#allocation5 + $0x34] sm:$0xf0]  ;;  %v2258_v13 = vld [vmem:[#allocation5 + $0xb0] sm:$0xf]  ;;  %v2196_v17 = vld [vmem:[#allocation5 + $0x38] sm:$0xf0] }
  0x55   : > { %1445 = vperm.xlu2 %2879, %v1440_v43   ;;  %926 = vmatpush.bf16.msra.mxu0 %v2203_v2  ;;  %v2195_v14 = vor.u32 %v2661_v12, %v2194_v11  ;;  %v2677_v15 = vld [vmem:[#allocation5 + $0xb4] sm:$0xf0]  ;;  %v2199_v19 = vor.u32 %v2660_v16, %v2196_v17  ;;  %v2298_v20 = vld [vmem:[#allocation5 + $0x100] sm:$0xf]  ;;  %v2687_v21 = vld [vmem:[#allocation5 + $0x104] sm:$0xf0]  ;;  %v562_v12 = vlaneseq }
  0x56   : > { %945 = vmatpush.bf16.msra.mxu1 %v2267_v3  ;;  %983 = vmatpush.bf16.msra.mxu3 %v2207_v7  ;;  %v2259_v18 = vor.u32 %v2677_v15, %v2258_v13  ;;  %v3366_v22 = vld [vmem:[%s3301_s27 + $0x8] sm:$0xff]  ;;  %v2299_v24 = vor.u32 %v2687_v21, %v2298_v20  ;;  %v2186_v26 = vld [vmem:[#allocation5 + $0x20] sm:$0xf]  ;;  %v2658_v32 = vld [vmem:[#allocation5 + $0x24] sm:$0xf]  ;;  %s2037_s29 = sshll.u32 %s3643_s25, 4  ;;  %s2038_s29 = int_to_ptr.vmem [resolvable:$true] %s2037_s29 }
  0x57   : > { %965 = vmatpush.bf16.msra.mxu2 %v2323_v46  ;;  %v639_v25 = vpack.c.bf16 %v3366_v22, %v3366_v22  ;;  %v2659_v27 = vld [vmem:[#allocation5 + $0x24] sm:$0xf0]  ;;  %v2250_v28 = vld [vmem:[#allocation5 + $0xa0] sm:$0xf]  ;;  %v2188_v33 = vld [vmem:[#allocation5 + $0x28] sm:$0xf0] }
  0x58   : > { %v2187_v30 = vor.u32 %v2659_v27, %v2186_v26  ;;  %v2675_v31 = vld [vmem:[#allocation5 + $0xa4] sm:$0xf0]  ;;  %v2191_v36 = vor.u32 %v2658_v32, %v2188_v33  ;;  %v2178_v38 = vld [vmem:[#allocation5 + $0x10] sm:$0xf]  ;;  %v2657_v39 = vld [vmem:[#allocation5 + $0x14] sm:$0xf0] }
  0x59   : > { %927 = vmatpush.bf16.msra.mxu0 %v2195_v14  ;;  %v671_v34 = vunpack.c.l.b16 %v639_v25  ;;  %v2251_v35 = vor.u32 %v2675_v31, %v2250_v28  ;;  %v2242_v40 = vld [vmem:[#allocation5 + $0x90] sm:$0xf]  ;;  %v2179_v41 = vor.u32 %v2657_v39, %v2178_v38  ;;  %v2673_v42 = vld [vmem:[#allocation5 + $0x94] sm:$0xf0]  ;;  %v2656_v43 = vld [vmem:[#allocation5 + $0x14] sm:$0xf] }
  0x5a   : > { %946 = vmatpush.bf16.msra.mxu1 %v2259_v18  ;;  %984 = vmatpush.bf16.msra.mxu3 %v2199_v19  ;;  %v2180_v44 = vld [vmem:[#allocation5 + $0x18] sm:$0xf0]  ;;  %v2243_v45 = vor.u32 %v2673_v42, %v2242_v40  ;;  %v2234_v50 = vld [vmem:[#allocation5 + $0x80] sm:$0xf]  ;;  %v2671_v51 = vld [vmem:[#allocation5 + $0x84] sm:$0xf0] }
  0x5b   : > { %966 = vmatpush.bf16.msra.mxu2 %v2315_v62  ;;  %v3372_v37 = vpack.c.b16 %v671_v34, %v670_v29  ;;  %v2183_v46 = vor.u32 %v2656_v43, %v2180_v44  ;;  %v2654_v52 = vld [vmem:[#allocation5 + $0x4] sm:$0xf]  ;;  %v2235_v53 = vor.u32 %v2671_v51, %v2234_v50  ;;  %v2172_v54 = vld [vmem:[#allocation5 + $0x8] sm:$0xf0]  ;;  %v2684_v56 = vld [vmem:[#allocation5 + $0xf4] sm:$0xf] }
  0x5c   : > { %1451 = vperm.xlu1 %2878, %v1442_v47   ;;  %1448 = vperm.xlu0 %2877, %v1441_v48   ;;  %v2170_v47 = vld [vmem:[#allocation5] sm:$0xf]  ;;  %v2655_v48 = vld [vmem:[#allocation5 + $0x4] sm:$0xf0]  ;;  %v2175_v55 = vor.u32 %v2654_v52, %v2172_v54  ;;  %v2292_v57 = vld [vmem:[#allocation5 + $0xf8] sm:$0xf0] }
  0x5d   : > { %1454 = vperm.xlu2 %2879, %v1443_v49   ;;  %928 = vmatpush.bf16.msra.mxu0 %v2187_v30  ;;  %v2171_v49 = vor.u32 %v2655_v48, %v2170_v47  ;;  %v3376_v58 = vld [vmem:[%s3301_s27 + $0x18] sm:$0xff]  ;;  %v3379_v59 = vld [vmem:[%s3301_s27 + $0x10] sm:$0xff]  ;;  %v2295_v60 = vor.u32 %v2684_v56, %v2292_v57  ;;  %v2682_v2 = vld [vmem:[#allocation5 + $0xe4] sm:$0xf]  ;;  %v3388_v25 = vshrl.u32 %v562_v12, 7  ;;  %v601_v27 = vrot.slane %v3363_v10, 7 }
  0x5e   : > { %947 = vmatpush.bf16.msra.mxu1 %v2251_v35  ;;  %985 = vmatpush.bf16.msra.mxu3 %v2191_v36  ;;  %v2700_v61 = vld [vmem:[#allocation5 + $0x174] sm:$0xf]  ;;  %v2356_v62 = vld [vmem:[#allocation5 + $0x178] sm:$0xf0]  ;;  %v640_v63 = vpack.c.bf16 %v3379_v59, %v3379_v59  ;;  %v641_v1 = vpack.c.bf16 %v3376_v58, %v3376_v58  ;;  %v2284_v3 = vld [vmem:[#allocation5 + $0xe8] sm:$0xf0] }
  0x5f   : > { %967 = vmatpush.bf16.msra.mxu2 %v2307_v9  ;;  %v2359_v0 = vor.u32 %v2700_v61, %v2356_v62  ;;  %v2287_v6 = vor.u32 %v2682_v2, %v2284_v3  ;;  %v2698_v7 = vld [vmem:[#allocation5 + $0x164] sm:$0xf]  ;;  %v2348_v8 = vld [vmem:[#allocation5 + $0x168] sm:$0xf0]  ;;  %v2680_v13 = vld [vmem:[#allocation5 + $0xd4] sm:$0xf] }
  0x60   : > { %v672_v4 = vunpack.c.l.b16 %v640_v63  ;;  %v673_v5 = vunpack.c.l.b16 %v641_v1  ;;  %v2351_v11 = vor.u32 %v2698_v7, %v2348_v8  ;;  %v2276_v14 = vld [vmem:[#allocation5 + $0xd8] sm:$0xf0]  ;;  %v2696_v16 = vld [vmem:[#allocation5 + $0x154] sm:$0xf]  ;;  %v2678_v18 = vld [vmem:[#allocation5 + $0xc4] sm:$0xf] }
  0x61   : > { %929 = vmatpush.bf16.msra.mxu0 %v2179_v41  ;;  %v2279_v15 = vor.u32 %v2680_v13, %v2276_v14  ;;  %v2340_v17 = vld [vmem:[#allocation5 + $0x158] sm:$0xf0]  ;;  %v2268_v20 = vld [vmem:[#allocation5 + $0xc8] sm:$0xf0]  ;;  %v2694_v21 = vld [vmem:[#allocation5 + $0x144] sm:$0xf] }
  0x62   : > { %948 = vmatpush.bf16.msra.mxu1 %v2243_v45  ;;  %986 = vmatpush.bf16.msra.mxu3 %v2183_v46  ;;  %v3385_v9 = vpack.c.b16 %v673_v5, %v672_v4  ;;  %v2343_v19 = vor.u32 %v2696_v16, %v2340_v17  ;;  %v2332_v23 = vld [vmem:[#allocation5 + $0x148] sm:$0xf0]  ;;  %v604_v28 = vrot.slane %v3376_v58, 7  ;;  %vm605_vm12 = vcmp.lt.s32.totalorder %v3388_v25, 1  ;;  %v2676_v33 = vld [vmem:[#allocation5 + $0xb4] sm:$0xf] }
  0x63   : > { %968 = vmatpush.bf16.msra.mxu2 %v2299_v24  ;;  %v2271_v24 = vor.u32 %v2678_v18, %v2268_v20  ;;  %v2335_v26 = vor.u32 %v2694_v21, %v2332_v23  ;;  %v558_v29 = vrot.slane %v3363_v10, 6  ;;  %v561_v30 = vrot.slane %v3376_v58, 6  ;;  %v2260_v34 = vld [vmem:[#allocation5 + $0xb8] sm:$0xf0]  ;;  %v2692_v38 = vld [vmem:[#allocation5 + $0x134] sm:$0xf] }
  0x64   : > { %vm564_vm13 = vcmp.lt.s32.totalorder %v3388_v25, 2  ;;  %v2263_v35 = vor.u32 %v2676_v33, %v2260_v34  ;;  %v609_v36 = vsel %vm605_vm12, %v604_v28, %v601_v27  ;;  %v559_v10 = vrot.slane %v3366_v22, 6  ;;  %v2324_v39 = vld [vmem:[#allocation5 + $0x138] sm:$0xf0]  ;;  %v2674_v43 = vld [vmem:[#allocation5 + $0xa4] sm:$0xf] }
  0x65   : > { %930 = vmatpush.bf16.msra.mxu0 %v2171_v49  ;;  %v602_v40 = vrot.slane %v3366_v22, 7  ;;  %v568_v41 = vsel %vm564_vm13, %v561_v30, %v558_v29  ;;  %v2327_v42 = vor.u32 %v2692_v38, %v2324_v39  ;;  %v2252_v44 = vld [vmem:[#allocation5 + $0xa8] sm:$0xf0]  ;;  %v2690_v46 = vld [vmem:[#allocation5 + $0x124] sm:$0xf]  ;;  %v603_v13 = vrot.slane %v3379_v59, 7 }
  0x66   : > { %969 = vmatmul.bf16.vlgmr.msra.gmra.mxu2 %v3372_v37  ;;  %949 = vmatpush.bf16.msra.mxu1 %v2235_v53  ;;  %v2255_v45 = vor.u32 %v2674_v43, %v2252_v44  ;;  %v2316_v47 = vld [vmem:[#allocation5 + $0x128] sm:$0xf0]  ;;  %v2672_v48 = vld [vmem:[#allocation5 + $0x94] sm:$0xf]  ;;  %v2244_v52 = vld [vmem:[#allocation5 + $0x98] sm:$0xf0]  ;;  %v567_v57 = vsel %vm564_vm13, %v558_v29, %v559_v10 }
  0x67   : > { %987 = vmatpush.bf16.msra.mxu3 %v2175_v55  ;;  %v2319_v51 = vor.u32 %v2690_v46, %v2316_v47  ;;  %v2688_v54 = vld [vmem:[#allocation5 + $0x114] sm:$0xf]  ;;  %v2308_v55 = vld [vmem:[#allocation5 + $0x118] sm:$0xf0]  ;;  %v608_v56 = vsel %vm605_vm12, %v601_v27, %v602_v40  ;;  %v2670_v1 = vld [vmem:[#allocation5 + $0x84] sm:$0xf] }
  0x68   : > { %v2311_v3 = vor.u32 %v2688_v54, %v2308_v55  ;;  %v2300_v12 = vld [vmem:[#allocation5 + $0x108] sm:$0xf0]  ;;  %v560_v14 = vrot.slane %v3379_v59, 6  ;;  %v607_v59 = vsel %vm605_vm12, %v602_v40, %v603_v13  ;;  %v2725_v44 = vld [vmem:[#allocation7 + $0xb8] sm:$0xff]  ;;  %v2722_v47 = vld [vmem:[#allocation7 + $0xa0] sm:$0xff]  ;;  %vm1435_vm6 = vcmp.lt.s32.totalorder %v3388_v25, 4 }
  0x69   : > { %999 = vmatpush.bf16.msrb.mxu0 %v2295_v60  ;;  %v2247_v60 = vor.u32 %v2672_v48, %v2244_v52  ;;  %v2723_v46 = vld [vmem:[#allocation7 + $0xa8] sm:$0xff]  ;;  %v2721_v48 = vld [vmem:[#allocation7 + $0x98] sm:$0xff]  ;;  %v2720_v52 = vld [vmem:[#allocation7 + $0x90] sm:$0xff]  ;;  %s2039_s18 = sshll.u32 %s2036_s28, 4  ;;  %s2025_s17 = scalar_lea.sflag [#allocation4], %s3295_s12  ;;  %s2040_s18 = int_to_ptr.hbm [resolvable:$true] %s2039_s18 }
  0x6a   : > { %1018 = vmatpush.bf16.msrb.mxu1 %v2359_v0  ;;  %v2236_v0 = vld [vmem:[#allocation5 + $0x88] sm:$0xf0]  ;;  %v565_v29 = vsel %vm564_vm13, %v560_v14, %v561_v30  ;;  %v2716_v54 = vld [vmem:[#allocation7 + $0x70] sm:$0xff]  ;;  %s3047_s11 = sshra.s32 %s2040_s18, 4  ;;  %s3053_s4 = scalar_lea.hbm %s3696_s10, 64  ;;  %s3048_s11 = int_to_ptr.hbm [resolvable:$true] %s3047_s11 }
  0x6b   : > { %v2239_v8 = vor.u32 %v2670_v1, %v2236_v0  ;;  %v2715_v55 = vld [vmem:[#allocation7 + $0x68] sm:$0xff]  ;;  %v2705_v1 = vld [vmem:[#allocation7 + $0x18] sm:$0xff]  ;;  %s3049_s22 = scalar_lea.hbm %s3048_s11, 32  ;;  %p3054_p11 = scmp.lt.s32.totalorder %s3048_s11, %s3696_s10 }
  0x6c   : > { %v2713_v0 = vld [vmem:[#allocation7 + $0x58] sm:$0xff]  ;;  %p3050_p1 = scmp.ne.s32.totalorder %s3048_s11, %s3049_s22  ;;  %p3055_p2 = scmp.lt.s32.totalorder %s3053_s4, %s3049_s22 }
  0x6d   : > { %1000 = vmatpush.bf16.msrb.mxu0 %v2287_v6 }
  0x6e   : > { %1019 = vmatpush.bf16.msrb.mxu1 %v2351_v11  ;;  %v2686_v11 = vld [vmem:[#allocation5 + $0x104] sm:$0xf]  ;;  %p3051_p4 = pnand %p3050_p1, %p3262_p3  ;;  %p3056_p9 = por %p3055_p2, %p3054_p11 }
  0x70   : > { %p3052_p8 = pneg %p3051_p4 }
  0x71   : > { %1001 = vmatpush.bf16.msrb.mxu0 %v2279_v15 }
  0x72   : > { %1020 = vmatpush.bf16.msrb.mxu1 %v2343_v19  ;;  %v2303_v19 = vor.u32 %v2686_v11, %v2300_v12  ;;  %v2703_v12 = vld [vmem:[#allocation7 + $0x8] sm:$0xff]  ;;  %p3057_p10 = pnand %p3056_p9, %p3052_p8 }
  0x75   : > { %1002 = vmatpush.bf16.msrb.mxu0 %v2271_v24  ;;  %v606_v24 = vsel %vm605_vm12, %v603_v13, %v604_v28  ;;  %v566_v28 = vsel %vm564_vm13, %v559_v10, %v560_v14  ;;  %v2711_v13 = vld [vmem:[#allocation7 + $0x48] sm:$0xff]  ;;  %v2702_v14 = vld [vmem:[#allocation7] sm:$0xff] }
  0x76   : > { %974 = vmatmul.bf16.gmra.mxu2 %v3385_v9  ;;  %1021 = vmatpush.bf16.msrb.mxu1 %v2335_v26 }
  0x79   : > { %1003 = vmatpush.bf16.msrb.mxu0 %v2263_v35 }
  0x7a   : > { %1022 = vmatpush.bf16.msrb.mxu1 %v2327_v42 }
  0x7d   : > { %1004 = vmatpush.bf16.msrb.mxu0 %v2255_v45  ;;  %v2724_v45 = vld [vmem:[#allocation7 + $0xb0] sm:$0xff] }
  0x7e   : > { %1023 = vmatpush.bf16.msrb.mxu1 %v2319_v51  ;;  %v2717_v51 = vld [vmem:[#allocation7 + $0x78] sm:$0xff] }
  0x7f   : > { %1279 = vmatpush.bf16.msrb.mxu3 %v2717_v51 }
  0x81   : > { %1005 = vmatpush.bf16.msrb.mxu0 %v2247_v60  ;;  %v2714_v60 = vld [vmem:[#allocation7 + $0x60] sm:$0xff] }
  0x82   : > { %1024 = vmatpush.bf16.msrb.mxu1 %v2311_v3 }
  0x83   : > { %1280 = vmatpush.bf16.msrb.mxu3 %v2716_v54 }
  0x85   : > { %1006 = vmatpush.bf16.msrb.mxu0 %v2239_v8 }
  0x86   : > { %1025 = vmatpush.bf16.msrb.mxu1 %v2303_v19 }
  0x87   : > { %1281 = vmatpush.bf16.msrb.mxu3 %v2715_v55 }
  0x8b   : > { %1282 = vmatpush.bf16.msrb.mxu3 %v2714_v60 }
  0x8f   : > { %1283 = vmatpush.bf16.msrb.mxu3 %v2713_v0 }
  0x9f   : > { %v3412_v49 = vpop.permute.xlu2 %580 }
  0xa0   : > { %vm587_vm2 = vcmp.eq.s32.totalorder %v3412_v49, 1 }
  0xa1   : > { %v591_v33 = vsel %vm587_vm2, 0.0, %v566_v28 }
  0xa2   : > { %v595_v22 = vpack.c.bf16 %v591_v33, %v591_v33 }
  0xa4   : > { %v648_v40 = vunpack.c.l.b16 %v595_v22 }
  0xa7   : > { %v3436_v20 = vpop.permute.xlu2 %583 }
  0xa8   : > { %vm588_vm3 = vcmp.eq.s32.totalorder %v3436_v20, 1 }
  0xa9   : > { %v592_v34 = vsel %vm588_vm3, 0.0, %v565_v29 }
  0xaa   : > { %v596_v38 = vpack.c.bf16 %v592_v34, %v592_v34 }
  0xb6   : > { %v3396_v31 = vpop.permute.xlu1 %615  ;;  %v3398_v32 = vpop.permute.xlu0 %574 }
  0xb7   : > { %vm626_vm14 = vcmp.eq.s32.totalorder %v3396_v31, 1  ;;  %vm585_vm15 = vcmp.eq.s32.totalorder %v3398_v32, 1 }
  0xb8   : > { %v630_v50 = vsel %vm626_vm14, 0.0, %v609_v36  ;;  %v589_v53 = vsel %vm585_vm15, 0.0, %v568_v41  ;;  %v649_v41 = vunpack.c.l.b16 %v596_v38 }
  0xb9   : > { %v634_v61 = vpack.c.bf16 %v630_v50, %v630_v50  ;;  %v593_v2 = vpack.c.bf16 %v589_v53, %v589_v53  ;;  %v2709_v50 = vld [vmem:[#allocation7 + $0x38] sm:$0xff]  ;;  %v2708_v53 = vld [vmem:[#allocation7 + $0x30] sm:$0xff] }
  0xba   : > { %v651_v42 = vpack.c.b16 %v649_v41, %v648_v40  ;;  %1260 = vmatpush.bf16.msrb.mxu2 %v2709_v50 }
  0xbb   : > { %v658_v15 = vunpack.c.l.b16 %v634_v61  ;;  %v646_v17 = vunpack.c.l.b16 %v593_v2  ;;  %v3473_v61 = vld [vmem:[%s3689_s3] sm:$0x3] }
  0xbc   : > { %v679_v3 = vperm.slane %v3473_v61, 0 }
  0xbe   : > { %v3424_v62 = vpop.permute.xlu1 %618  ;;  %v3426_v63 = vpop.permute.xlu0 %577  ;;  %1261 = vmatpush.bf16.msrb.mxu2 %v2708_v53 }
  0xbf   : > { %vm627_vm0 = vcmp.eq.s32.totalorder %v3424_v62, 1  ;;  %vm586_vm1 = vcmp.eq.s32.totalorder %v3426_v63, 1 }
  0xc0   : > { %v631_v4 = vsel %vm627_vm0, 0.0, %v608_v56  ;;  %v590_v5 = vsel %vm586_vm1, 0.0, %v567_v57  ;;  %v2718_v56 = vld [vmem:[#allocation7 + $0x80] sm:$0xff] }
  0xc1   : > { %v635_v6 = vpack.c.bf16 %v631_v4, %v631_v4  ;;  %v594_v7 = vpack.c.bf16 %v590_v5, %v590_v5  ;;  %v2706_v57 = vld [vmem:[#allocation7 + $0x20] sm:$0xff]  ;;  %v2704_v4 = vld [vmem:[#allocation7 + $0x10] sm:$0xff] }
  0xc2   : > { %v2712_v5 = vld [vmem:[#allocation7 + $0x50] sm:$0xff] }
  0xc3   : > { %v659_v16 = vunpack.c.l.b16 %v635_v6  ;;  %v647_v18 = vunpack.c.l.b16 %v594_v7  ;;  %1284 = vmatpush.bf16.msrb.mxu3 %v2712_v5 }
  0xc5   : > { %v650_v21 = vpack.c.b16 %v647_v18, %v646_v17  ;;  %v662_v23 = vpack.c.b16 %v659_v16, %v658_v15  ;;  %v2710_v17 = vld [vmem:[#allocation7 + $0x40] sm:$0xff] }
  0xc6   : > { %v3443_v26 = vpop.permute.xlu1 %624  ;;  %v3447_v27 = vpop.permute.xlu0 %621 }
  0xc7   : > { %vm629_vm4 = vcmp.eq.s32.totalorder %v3443_v26, 1  ;;  %vm628_vm5 = vcmp.eq.s32.totalorder %v3447_v27, 1  ;;  %931 = vmatmul.bf16.vlgmr.msra.gmra.mxu0 %v650_v21  ;;  %950 = vmatmul.bf16.vlgmr.msra.gmra.mxu1 %v662_v23  ;;  %v2749_v26 = vld [vmem:[#allocation8 + $0xb8] sm:$0xff] }
  0xc8   : > { %988 = vmatmul.bf16.vlgmr.msra.gmra.mxu3 %v650_v21  ;;  %v633_v58 = vsel %vm629_vm4, 0.0, %v606_v24  ;;  %v632_v30 = vsel %vm628_vm5, 0.0, %v607_v59  ;;  %1298 = vmatpush.bf16.msra.mxu0 %v2725_v44 }
  0xc9   : > { %v637_v35 = vpack.c.bf16 %v633_v58, %v633_v58  ;;  %v636_v36 = vpack.c.bf16 %v632_v30, %v632_v30  ;;  %1285 = vmatpush.bf16.msrb.mxu3 %v2711_v13 }
  0xcb   : > { %v661_v39 = vunpack.c.l.b16 %v637_v35  ;;  %v660_v10 = vunpack.c.l.b16 %v636_v36 }
  0xcc   : > { %1299 = vmatpush.bf16.msra.mxu0 %v2724_v45 }
  0xcd   : > { %v663_v43 = vpack.c.b16 %v661_v39, %v660_v10  ;;  %1286 = vmatpush.bf16.msrb.mxu3 %v2710_v17 }
  0xd0   : > { %1300 = vmatpush.bf16.msra.mxu0 %v2723_v46 }
  0xd1   : > { %1709 = vmatpush.bf16.msra.mxu3 %v2749_v26 }
  0xd4   : > { %1301 = vmatpush.bf16.msra.mxu0 %v2722_v47 }
  0xd7   : > { %936 = vmatmul.bf16.gmra.mxu0 %v651_v42  ;;  %955 = vmatmul.bf16.gmra.mxu1 %v663_v43 }
  0xd8   : > { %993 = vmatmul.bf16.gmra.mxu3 %v651_v42  ;;  %1302 = vmatpush.bf16.msra.mxu0 %v2721_v48 }
  0xdc   : > { %1303 = vmatpush.bf16.msra.mxu0 %v2720_v52 }
  0xe7   : > { %1007 = vmatmul.bf16.vlgmr.msrb.gmra.mxu0 %v662_v23  ;;  %1026 = vmatmul.bf16.vlgmr.msrb.gmra.mxu1 %v3372_v37  ;;  %v2719_v37 = vld [vmem:[#allocation7 + $0x88] sm:$0xff] }
  0xe8   : > { %1304 = vmatpush.bf16.msra.mxu0 %v2719_v37 }
  0xe9   : > { %v970_v2 = vpop.f32.mrf.mxu2 }
  0xec   : > { %1305 = vmatpush.bf16.msra.mxu0 %v2718_v56 }
  0xf1   : > { %v972_v16 = vpop.f32.mrf.mxu2 }
  0xf7   : > { %1012 = vmatmul.bf16.gmra.mxu0 %v663_v43  ;;  %1031 = vmatmul.bf16.gmra.mxu1 %v3385_v9  ;;  %v2707_v9 = vld [vmem:[#allocation7 + $0x28] sm:$0xff] }
  0xf8   : > { %1262 = vmatpush.bf16.msrb.mxu2 %v2707_v9 }
  0xf9   : > { %v975_v35 = vpop.f32.mrf.mxu2 }
  0xfc   : > { %1263 = vmatpush.bf16.msrb.mxu2 %v2706_v57 }
 0x100   : > { %1264 = vmatpush.bf16.msrb.mxu2 %v2705_v1 }
 0x101   : > { %v977_v50 = vpop.f32.mrf.mxu2 }
 0x104   : > { %1265 = vmatpush.bf16.msrb.mxu2 %v2704_v4 }
 0x108   : > { %1266 = vmatpush.bf16.msrb.mxu2 %v2703_v12 }
 0x10c   : > { %1267 = vmatpush.bf16.msrb.mxu2 %v2702_v14 }
 0x144   : > { %v932_v6 = vpop.f32.mrf.mxu0  ;;  %v951_v7 = vpop.f32.mrf.mxu1 }
 0x145   : > { %v933_v8 = vadd.f32 %v932_v6, %v679_v3 }
 0x147   : > { %v952_v11 = vadd.f32 %v951_v7, %v933_v8 }
 0x149   : > { %v971_v15 = vadd.f32 %v970_v2, %v952_v11 }
 0x14b   : > { %v1037_v23 = vmax.f32 %v971_v15, 0.0 }
 0x14c   : > { %v934_v18 = vpop.f32.mrf.mxu0  ;;  %v953_v19 = vpop.f32.mrf.mxu1 }
 0x14d   : > { %v935_v21 = vadd.f32 %v934_v18, %v679_v3  ;;  %v1073_v29 = vpack.c.bf16 %v1037_v23, %v1037_v23  ;;  %v1041_v44 = vrot.slane %v1037_v23, 6  ;;  %v1057_v45 = vrot.slane %v1037_v23, 7 }
 0x14f   : > { %v954_v24 = vadd.f32 %v953_v19, %v935_v21  ;;  %v1105_v36 = vunpack.c.l.b16 %v1073_v29 }
 0x151   : > { %v973_v59 = vadd.f32 %v972_v16, %v954_v24 }
 0x153   : > { %v1038_v28 = vmax.f32 %v973_v59, 0.0 }
 0x154   : > { %v937_v58 = vpop.f32.mrf.mxu0  ;;  %v956_v30 = vpop.f32.mrf.mxu1 }
 0x155   : > { %v1074_v33 = vpack.c.bf16 %v1038_v28, %v1038_v28  ;;  %v938_v34 = vadd.f32 %v937_v58, %v679_v3  ;;  %v1042_v40 = vrot.slane %v1038_v28, 6  ;;  %v1058_v41 = vrot.slane %v1038_v28, 7 }
 0x157   : > { %v1106_v22 = vunpack.c.l.b16 %v1074_v33  ;;  %v957_v38 = vadd.f32 %v956_v30, %v938_v34  ;;  %v1047_v51 = vsel %vm564_vm13, %v1041_v44, %v1042_v40  ;;  %v1063_v52 = vsel %vm605_vm12, %v1057_v45, %v1058_v41 }
 0x158   : > { %v1050_v9 = vsel %vm586_vm1, 0.0, %v1047_v51  ;;  %v1066_v55 = vsel %vm627_vm0, 0.0, %v1063_v52  ;;  %v2741_v51 = vld [vmem:[#allocation8 + $0x78] sm:$0xff] }
 0x159   : > { %v1109_v39 = vpack.c.b16 %v1106_v22, %v1105_v36  ;;  %v976_v10 = vadd.f32 %v975_v35, %v957_v38  ;;  %v1054_v1 = vpack.c.bf16 %v1050_v9, %v1050_v9  ;;  %v1070_v0 = vpack.c.bf16 %v1066_v55, %v1066_v55  ;;  %v2733_v52 = vld [vmem:[#allocation8 + $0x38] sm:$0xff]  ;;  %1690 = vmatpush.bf16.msra.mxu2 %v2741_v51  ;;  %v2743_v9 = vld [vmem:[#allocation8 + $0x88] sm:$0xff] }
 0x15a   : > { %1671 = vmatpush.bf16.msra.mxu1 %v2733_v52 }
 0x15b   : > { %1306 = vmatmul.bf16.vlgmr.msra.gmra.mxu0 %v1109_v39  ;;  %v1039_v47 = vmax.f32 %v976_v10, 0.0  ;;  %v1082_v13 = vunpack.c.l.b16 %v1054_v1  ;;  %v1094_v15 = vunpack.c.l.b16 %v1070_v0  ;;  %v2742_v1 = vld [vmem:[#allocation8 + $0x80] sm:$0xff] }
 0x15c   : > { %v939_v42 = vpop.f32.mrf.mxu0  ;;  %v958_v46 = vpop.f32.mrf.mxu1  ;;  %v2738_v0 = vld [vmem:[#allocation8 + $0x60] sm:$0xff] }
 0x15d   : > { %v940_v43 = vadd.f32 %v939_v42, %v679_v3  ;;  %v1075_v37 = vpack.c.bf16 %v1039_v47, %v1039_v47  ;;  %v1043_v16 = vrot.slane %v1039_v47, 6  ;;  %v1059_v17 = vrot.slane %v1039_v47, 7  ;;  %v989_v42 = vpop.f32.mrf.mxu3 }
 0x15f   : > { %v959_v48 = vadd.f32 %v958_v46, %v940_v43  ;;  %v1107_v2 = vunpack.c.l.b16 %v1075_v37  ;;  %v1046_v23 = vsel %vm564_vm13, %v1042_v40, %v1043_v16  ;;  %v1062_v24 = vsel %vm605_vm12, %v1058_v41, %v1059_v17  ;;  %v2748_v43 = vld [vmem:[#allocation8 + $0xb0] sm:$0xff]  ;;  %v2746_v46 = vld [vmem:[#allocation8 + $0xa0] sm:$0xff] }
 0x160   : > { %v1051_v28 = vsel %vm587_vm2, 0.0, %v1046_v23  ;;  %v1067_v58 = vsel %vm628_vm5, 0.0, %v1062_v24  ;;  %1710 = vmatpush.bf16.msra.mxu3 %v2748_v43  ;;  %v2732_v37 = vld [vmem:[#allocation8 + $0x30] sm:$0xff] }
 0x161   : > { %v978_v53 = vadd.f32 %v977_v50, %v959_v48  ;;  %v1055_v34 = vpack.c.bf16 %v1051_v28, %v1051_v28  ;;  %v1071_v35 = vpack.c.bf16 %v1067_v58, %v1067_v58  ;;  %v2745_v48 = vld [vmem:[#allocation8 + $0x98] sm:$0xff]  ;;  %1672 = vmatpush.bf16.msra.mxu1 %v2732_v37 }
 0x163   : > { %v1040_v54 = vmax.f32 %v978_v53, 0.0  ;;  %v1083_v38 = vunpack.c.l.b16 %v1055_v34  ;;  %v1095_v39 = vunpack.c.l.b16 %v1071_v35  ;;  %v2744_v53 = vld [vmem:[#allocation8 + $0x90] sm:$0xff] }
 0x164   : > { %v1008_v41 = vpop.f32.mrf.mxu0 }
 0x165   : > { %v1044_v56 = vrot.slane %v1040_v54, 6  ;;  %v1060_v57 = vrot.slane %v1040_v54, 7  ;;  %v1076_v60 = vpack.c.bf16 %v1040_v54, %v1040_v54  ;;  %v991_v27 = vpop.f32.mrf.mxu3  ;;  %v2740_v54 = vld [vmem:[#allocation8 + $0x70] sm:$0xff] }
 0x166   : > { %1691 = vmatpush.bf16.msra.mxu2 %v2740_v54 }
 0x167   : > { %v1108_v3 = vunpack.c.l.b16 %v1076_v60  ;;  %v1048_v4 = vsel %vm564_vm13, %v1044_v56, %v1041_v44  ;;  %v1064_v5 = vsel %vm605_vm12, %v1060_v57, %v1057_v45  ;;  %v1045_v21 = vsel %vm564_vm13, %v1043_v16, %v1044_v56  ;;  %v2747_v45 = vld [vmem:[#allocation8 + $0xa8] sm:$0xff]  ;;  %v2728_v16 = vld [vmem:[#allocation8 + $0x10] sm:$0xff] }
 0x168   : > { %v1049_v6 = vsel %vm585_vm15, 0.0, %v1048_v4  ;;  %v1065_v62 = vsel %vm626_vm14, 0.0, %v1064_v5  ;;  %v1061_v31 = vsel %vm605_vm12, %v1059_v17, %v1060_v57  ;;  %v1052_v59 = vsel %vm588_vm3, 0.0, %v1045_v21  ;;  %1711 = vmatpush.bf16.msra.mxu3 %v2747_v45  ;;  %v2739_v57 = vld [vmem:[#allocation8 + $0x68] sm:$0xff]  ;;  %v2880_v5 = vld [vmem:[%s3691_s5] ss:$0 sm:$0xff] }
 0x169   : > { %v1110_v7 = vpack.c.b16 %v1108_v3, %v1107_v2  ;;  %v1053_v8 = vpack.c.bf16 %v1049_v6, %v1049_v6  ;;  %v1069_v11 = vpack.c.bf16 %v1065_v62, %v1065_v62  ;;  %v1068_v29 = vsel %vm629_vm4, 0.0, %v1061_v31  ;;  %v2731_v60 = vld [vmem:[#allocation8 + $0x28] sm:$0xff]  ;;  %v2730_v2 = vld [vmem:[#allocation8 + $0x20] sm:$0xff]  ;;  %v1027_v3 = vpop.f32.mrf.mxu1 }
 0x16a   : > { %v1056_v30 = vpack.c.bf16 %v1052_v59, %v1052_v59  ;;  %v1072_v33 = vpack.c.bf16 %v1068_v29, %v1068_v29  ;;  %1692 = vmatpush.bf16.msra.mxu2 %v2739_v57  ;;  %1673 = vmatpush.bf16.msra.mxu1 %v2731_v60  ;;  %v680_v6 = vperm.slane %v3473_v61, 1  ;;  %v2727_v21 = vld [vmem:[#allocation8 + $0x8] sm:$0xff] }
 0x16b   : > { %1311 = vmatmul.bf16.gmra.mxu0 %v1110_v7  ;;  %v1081_v12 = vunpack.c.l.b16 %v1053_v8  ;;  %v1093_v14 = vunpack.c.l.b16 %v1069_v11  ;;  %v2737_v8 = vld [vmem:[#allocation8 + $0x58] sm:$0xff] }
 0x16c   : > { %v1084_v36 = vunpack.c.l.b16 %v1056_v30  ;;  %v1096_v22 = vunpack.c.l.b16 %v1072_v33  ;;  %v3508_v44 = vpop.f32.mrf.mxu0  ;;  %1712 = vmatpush.bf16.msra.mxu3 %v2746_v46  ;;  %v2729_v11 = vld [vmem:[#allocation8 + $0x18] sm:$0xff]  ;;  %v992_v29 = vadd.f32 %v991_v27, %v680_v6  ;;  %v2734_v30 = vld [vmem:[#allocation8 + $0x40] sm:$0xff] }
 0x16d   : > { %v1085_v18 = vpack.c.b16 %v1082_v13, %v1081_v12  ;;  %v1097_v19 = vpack.c.b16 %v1094_v15, %v1093_v14  ;;  %v3512_v50 = vpop.f32.mrf.mxu3  ;;  %v990_v13 = vadd.f32 %v989_v42, %v680_v6  ;;  %v2736_v15 = vld [vmem:[#allocation8 + $0x50] sm:$0xff] }
 0x16e   : > { %v1086_v10 = vpack.c.b16 %v1084_v36, %v1083_v38  ;;  %v1098_v40 = vpack.c.b16 %v1096_v22, %v1095_v39  ;;  %1693 = vmatpush.bf16.msra.mxu2 %v2738_v0  ;;  %1674 = vmatpush.bf16.msra.mxu1 %v2730_v2  ;;  %v1011_v33 = vadd.f32 %v3508_v44, %v992_v29  ;;  %v2726_v36 = vld [vmem:[#allocation8] sm:$0xff] }
 0x16f   : > { %1268 = vmatmul.bf16.vlgmr.msrb.gmra.mxu2 %v1085_v18  ;;  %1287 = vmatmul.bf16.vlgmr.msrb.gmra.mxu3 %v1097_v19  ;;  %v1009_v17 = vadd.f32 %v1008_v41, %v990_v13  ;;  %v2735_v19 = vld [vmem:[#allocation8 + $0x48] sm:$0xff]  ;;  %v995_v45 = vadd.f32 %v3512_v50, %v680_v6 }
 0x170   : > { %1713 = vmatpush.bf16.msra.mxu3 %v2745_v48 }
 0x171   : > { %v1029_v31 = vpop.f32.mrf.mxu1  ;;  %v1028_v28 = vadd.f32 %v1027_v3, %v1009_v17 }
 0x172   : > { %1694 = vmatpush.bf16.msra.mxu2 %v2737_v8  ;;  %1675 = vmatpush.bf16.msra.mxu1 %v2729_v11  ;;  %v1030_v38 = vadd.f32 %v1029_v31, %v1011_v33 }
 0x174   : > { %v3510_v47 = vpop.f32.mrf.mxu0  ;;  %1714 = vmatpush.bf16.msra.mxu3 %v2744_v53 }
 0x175   : > { %v3516_v56 = vpop.f32.mrf.mxu3  ;;  %v1014_v51 = vadd.f32 %v3510_v47, %v995_v45 }
 0x176   : > { %1695 = vmatpush.bf16.msra.mxu2 %v2736_v15  ;;  %1676 = vmatpush.bf16.msra.mxu1 %v2728_v16  ;;  %v997_v60 = vadd.f32 %v3516_v56, %v680_v6  ;;  %v3540_v6 = vpop.permute.xlu0 %1448 }
 0x177   : > { %vm1457_vm7 = vcmp.eq.s32.totalorder %v3540_v6, 1 }
 0x178   : > { %1715 = vmatpush.bf16.msra.mxu3 %v2743_v9 }
 0x179   : > { %v1032_v43 = vpop.f32.mrf.mxu1 }
 0x17a   : > { %1696 = vmatpush.bf16.msra.mxu2 %v2735_v19  ;;  %1677 = vmatpush.bf16.msra.mxu1 %v2727_v21 }
 0x17c   : > { %v3514_v55 = vpop.f32.mrf.mxu0  ;;  %1716 = vmatpush.bf16.msra.mxu3 %v2742_v1  ;;  %v1033_v1 = vadd.f32 %v1032_v43, %v1014_v51 }
 0x17d   : > { %v1016_v3 = vadd.f32 %v3514_v55, %v997_v60 }
 0x17e   : > { %1697 = vmatpush.bf16.msra.mxu2 %v2734_v30  ;;  %1678 = vmatpush.bf16.msra.mxu1 %v2726_v36 }
 0x17f   : > { %1273 = vmatmul.bf16.gmra.mxu2 %v1086_v10  ;;  %1292 = vmatmul.bf16.gmra.mxu3 %v1098_v40 }
 0x181   : > { %v1034_v47 = vpop.f32.mrf.mxu1 }
 0x182   : > { %v1035_v13 = vadd.f32 %v1034_v47, %v1016_v3 }
 0x1d8   : > { %v1307_v4 = vpop.f32.mrf.mxu0 }
 0x1e0   : > { %v1309_v23 = vpop.f32.mrf.mxu0 }
 0x1e8   : > { %v1312_v27 = vpop.f32.mrf.mxu0 }
 0x1f2   : > { %v1269_v62 = vpop.f32.mrf.mxu2  ;;  %v1288_v7 = vpop.f32.mrf.mxu3 }
 0x1f3   : > { %v1270_v12 = vadd.f32 %v2880_v5, %v1269_v62 }
 0x1f5   : > { %v1289_v14 = vadd.f32 %v1288_v7, %v1270_v12  ;;  %v1314_v7 = vpop.f32.mrf.mxu0 }
 0x1f7   : > { %v1308_v18 = vadd.f32 %v1307_v4, %v1289_v14 }
 0x1f9   : > { %v1317_v61 = vmax.f32 %v1308_v18, 0.0 }
 0x1fa   : > { %v1271_v24 = vpop.f32.mrf.mxu2  ;;  %v1290_v59 = vpop.f32.mrf.mxu3 }
 0x1fb   : > { %v1272_v58 = vadd.f32 %v2880_v5, %v1271_v24  ;;  %v1321_v34 = vadd.f32 %v1317_v61, %v1028_v28 }
 0x1fd   : > { %v1291_v35 = vadd.f32 %v1290_v59, %v1272_v58  ;;  %v3523_v39 = vmax.f32 %v1321_v34, 0.0 }
 0x1ff   : > { %v1310_v22 = vadd.f32 %v1309_v23, %v1291_v35  ;;  %v1484_v48 = vpack.c.bf16 %v3523_v39, %v3523_v39  ;;  %v1431_v56 = vrot.slane %v3523_v39, 4  ;;  %v3557_v23 = vpop.permute.xlu2 %1445 }
 0x200   : > { %vm1456_vm8 = vcmp.eq.s32.totalorder %v3557_v23, 1 }
 0x201   : > { %v1318_v10 = vmax.f32 %v1310_v22, 0.0  ;;  %v1516_v37 = vunpack.c.l.b16 %v1484_v48 }
 0x202   : > { %v1274_v40 = vpop.f32.mrf.mxu2  ;;  %v1293_v26 = vpop.f32.mrf.mxu3 }
 0x203   : > { %v1322_v41 = vadd.f32 %v1318_v10, %v1030_v38  ;;  %v1275_v42 = vadd.f32 %v2880_v5, %v1274_v40 }
 0x205   : > { %v3526_v46 = vmax.f32 %v1322_v41, 0.0  ;;  %v1294_v44 = vadd.f32 %v1293_v26, %v1275_v42 }
 0x207   : > { %v1313_v52 = vadd.f32 %v1312_v27, %v1294_v44  ;;  %v1485_v53 = vpack.c.bf16 %v3526_v46, %v3526_v46  ;;  %v1432_v8 = vrot.slane %v3526_v46, 4  ;;  %v1469_v11 = vrot.slane %v3526_v46, 6  ;;  %v3574_v48 = vpop.permute.xlu2 %1454 }
 0x208   : > { %vm1459_vm9 = vcmp.eq.s32.totalorder %v3574_v48, 1 }
 0x209   : > { %v1319_v54 = vmax.f32 %v1313_v52, 0.0  ;;  %v1517_v9 = vunpack.c.l.b16 %v1485_v53  ;;  %v1438_v15 = vsel %vm1435_vm6, %v1431_v56, %v1432_v8  ;;  %v3580_v53 = vpop.permute.xlu1 %1451 }
 0x20a   : > { %v1276_v57 = vpop.f32.mrf.mxu2  ;;  %v1295_v2 = vpop.f32.mrf.mxu3  ;;  %v1461_v21 = vsel %vm1457_vm7, 0.0, %v1438_v15  ;;  %vm1458_vm10 = vcmp.eq.s32.totalorder %v3580_v53, 1  ;;  %v2765_v15 = vld [vmem:[#allocation10 + $0x78] sm:$0xff] }
 0x20b   : > { %v1277_v50 = vadd.f32 %v2880_v5, %v1276_v57  ;;  %v1520_v0 = vpack.c.b16 %v1517_v9, %v1516_v37  ;;  %v1323_v4 = vadd.f32 %v1319_v54, %v1033_v1  ;;  %v1468_v5 = vrot.slane %v3523_v39, 6  ;;  %1970 = vmatpush.bf16.msrb.mxu1 %v2765_v15 }
 0x20c   : > { %v1465_v29 = vpack.c.bf16 %v1461_v21, %v1461_v21  ;;  %v2756_v21 = vld [vmem:[#allocation10 + $0x30] sm:$0xff] }
 0x20d   : > { %v1296_v62 = vadd.f32 %v1295_v2, %v1277_v50  ;;  %1717 = vmatmul.bf16.vlgmr.msra.gmra.mxu3 %v1520_v0  ;;  %v3542_v55 = vmax.f32 %v1323_v4, 0.0  ;;  %v1474_v16 = vsel %vm564_vm13, %v1468_v5, %v1469_v11 }
 0x20e   : > { %v1477_v31 = vsel %vm586_vm1, 0.0, %v1474_v16  ;;  %v1493_v26 = vunpack.c.l.b16 %v1465_v29  ;;  %v2757_v16 = vld [vmem:[#allocation10 + $0x38] sm:$0xff]  ;;  %v2762_v29 = vld [vmem:[#allocation10 + $0x60] sm:$0xff] }
 0x20f   : > { %v1315_v12 = vadd.f32 %v1314_v7, %v1296_v62  ;;  %v1486_v19 = vpack.c.bf16 %v3542_v55, %v3542_v55  ;;  %v1481_v28 = vpack.c.bf16 %v1477_v31, %v1477_v31  ;;  %v1433_v45 = vrot.slane %v3542_v55, 4  ;;  %1951 = vmatpush.bf16.msrb.mxu0 %v2757_v16  ;;  %2775 = vmatpush.bf16.msrb.mxu3 %v2757_v16  ;;  %v2767_v31 = vld [vmem:[#allocation10 + $0x88] sm:$0xff] }
 0x210   : > { %v1470_v44 = vrot.slane %v3542_v55, 6 }
 0x211   : > { %v1320_v14 = vmax.f32 %v1315_v12, 0.0  ;;  %v1518_v58 = vunpack.c.l.b16 %v1486_v19  ;;  %v1505_v42 = vunpack.c.l.b16 %v1481_v28  ;;  %v1437_v54 = vsel %vm1435_vm6, %v1432_v8, %v1433_v45  ;;  %v2773_v12 = vld [vmem:[#allocation10 + $0xb8] sm:$0xff]  ;;  %v2764_v19 = vld [vmem:[#allocation10 + $0x70] sm:$0xff]  ;;  %v2754_v28 = vld [vmem:[#allocation10 + $0x20] sm:$0xff] }
 0x212   : > { %v1473_v37 = vsel %vm564_vm13, %v1469_v11, %v1470_v44  ;;  %v1462_v60 = vsel %vm1458_vm10, 0.0, %v1437_v54  ;;  %1989 = vmatpush.bf16.msrb.mxu2 %v2773_v12  ;;  %1971 = vmatpush.bf16.msrb.mxu1 %v2764_v19 }
 0x213   : > { %v1324_v17 = vadd.f32 %v1320_v14, %v1035_v13  ;;  %v1478_v1 = vsel %vm587_vm2, 0.0, %v1473_v37  ;;  %v1466_v2 = vpack.c.bf16 %v1462_v60, %v1462_v60  ;;  %v2770_v13 = vld [vmem:[#allocation10 + $0xa0] sm:$0xff]  ;;  %v2769_v14 = vld [vmem:[#allocation10 + $0x98] sm:$0xff]  ;;  %1952 = vmatpush.bf16.msrb.mxu0 %v2756_v21  ;;  %2776 = vmatpush.bf16.msrb.mxu3 %v2756_v21 }
 0x214   : > { %v1482_v3 = vpack.c.bf16 %v1478_v1, %v1478_v1 }
 0x215   : > { %v3549_v18 = vmax.f32 %v1324_v17, 0.0  ;;  %v1494_v47 = vunpack.c.l.b16 %v1466_v2  ;;  %v2768_v17 = vld [vmem:[#allocation10 + $0x90] sm:$0xff] }
 0x216   : > { %v1506_v7 = vunpack.c.l.b16 %v1482_v3 }
 0x217   : > { %v1434_v61 = vrot.slane %v3549_v18, 4  ;;  %v1471_v24 = vrot.slane %v3549_v18, 6  ;;  %v1487_v59 = vpack.c.bf16 %v3549_v18, %v3549_v18 }
 0x219   : > { %v1519_v30 = vunpack.c.l.b16 %v1487_v59  ;;  %v1439_v33 = vsel %vm1435_vm6, %v1434_v61, %v1431_v56  ;;  %v1475_v34 = vsel %vm564_vm13, %v1471_v24, %v1468_v5  ;;  %v1436_v51 = vsel %vm1435_vm6, %v1433_v45, %v1434_v61  ;;  %v2772_v56 = vld [vmem:[#allocation10 + $0xb0] sm:$0xff]  ;;  %v2771_v5 = vld [vmem:[#allocation10 + $0xa8] sm:$0xff]  ;;  %v2766_v59 = vld [vmem:[#allocation10 + $0x80] sm:$0xff] }
 0x21a   : > { %v1460_v35 = vsel %vm1456_vm8, 0.0, %v1439_v33  ;;  %v1476_v36 = vsel %vm585_vm15, 0.0, %v1475_v34  ;;  %v1472_v52 = vsel %vm564_vm13, %v1470_v44, %v1471_v24  ;;  %v1463_v9 = vsel %vm1459_vm9, 0.0, %v1436_v51  ;;  %1990 = vmatpush.bf16.msrb.mxu2 %v2772_v56  ;;  %v2763_v61 = vld [vmem:[#allocation10 + $0x68] sm:$0xff]  ;;  %v2753_v33 = vld [vmem:[#allocation10 + $0x18] sm:$0xff]  ;;  %v2750_v45 = vld [vmem:[#allocation10] sm:$0xff] }
 0x21b   : > { %v1521_v22 = vpack.c.b16 %v1519_v30, %v1518_v58  ;;  %v1464_v38 = vpack.c.bf16 %v1460_v35, %v1460_v35  ;;  %v1480_v10 = vpack.c.bf16 %v1476_v36, %v1476_v36  ;;  %v1479_v57 = vsel %vm588_vm3, 0.0, %v1472_v52  ;;  %v2755_v24 = vld [vmem:[#allocation10 + $0x28] sm:$0xff]  ;;  %1972 = vmatpush.bf16.msrb.mxu1 %v2763_v61  ;;  %v2761_v30 = vld [vmem:[#allocation10 + $0x58] sm:$0xff]  ;;  %v2881_v34 = vld [vmem:[%s3693_s7] ss:$0 sm:$0xff] }
 0x21c   : > { %v1467_v50 = vpack.c.bf16 %v1463_v9, %v1463_v9  ;;  %v1483_v0 = vpack.c.bf16 %v1479_v57, %v1479_v57  ;;  %1953 = vmatpush.bf16.msrb.mxu0 %v2755_v24  ;;  %2777 = vmatpush.bf16.msrb.mxu3 %v2755_v24  ;;  %v2760_v36 = vld [vmem:[#allocation10 + $0x50] sm:$0xff] }
 0x21d   : > { %1722 = vmatmul.bf16.gmra.mxu3 %v1521_v22  ;;  %v1492_v40 = vunpack.c.l.b16 %v1464_v38  ;;  %v1504_v41 = vunpack.c.l.b16 %v1480_v10  ;;  %v2752_v22 = vld [vmem:[#allocation10 + $0x10] sm:$0xff] }
 0x21e   : > { %v1495_v4 = vunpack.c.l.b16 %v1467_v50  ;;  %v1507_v62 = vunpack.c.l.b16 %v1483_v0  ;;  %1991 = vmatpush.bf16.msrb.mxu2 %v2771_v5 }
 0x21f   : > { %v1496_v43 = vpack.c.b16 %v1493_v26, %v1492_v40  ;;  %v1508_v27 = vpack.c.b16 %v1505_v42, %v1504_v41  ;;  %1973 = vmatpush.bf16.msrb.mxu1 %v2762_v29  ;;  %v2759_v40 = vld [vmem:[#allocation10 + $0x48] sm:$0xff] }
 0x220   : > { %v1497_v8 = vpack.c.b16 %v1495_v4, %v1494_v47  ;;  %v1509_v11 = vpack.c.b16 %v1507_v62, %v1506_v7  ;;  %1954 = vmatpush.bf16.msrb.mxu0 %v2754_v28  ;;  %2778 = vmatpush.bf16.msrb.mxu3 %v2754_v28  ;;  %v2751_v26 = vld [vmem:[#allocation10 + $0x8] sm:$0xff] }
 0x221   : > { %1679 = vmatmul.bf16.vlgmr.msra.gmra.mxu1 %v1496_v43  ;;  %1698 = vmatmul.bf16.vlgmr.msra.gmra.mxu2 %v1508_v27  ;;  %v2758_v43 = vld [vmem:[#allocation10 + $0x40] sm:$0xff] }
 0x222   : > { %1992 = vmatpush.bf16.msrb.mxu2 %v2770_v13 }
 0x223   : > { %1974 = vmatpush.bf16.msrb.mxu1 %v2761_v30 }
 0x224   : > { %1955 = vmatpush.bf16.msrb.mxu0 %v2753_v33  ;;  %2779 = vmatpush.bf16.msrb.mxu3 %v2753_v33 }
 0x226   : > { %1993 = vmatpush.bf16.msrb.mxu2 %v2769_v14 }
 0x227   : > { %1975 = vmatpush.bf16.msrb.mxu1 %v2760_v36 }
 0x228   : > { %1956 = vmatpush.bf16.msrb.mxu0 %v2752_v22  ;;  %2780 = vmatpush.bf16.msrb.mxu3 %v2752_v22 }
 0x22a   : > { %1994 = vmatpush.bf16.msrb.mxu2 %v2768_v17 }
 0x22b   : > { %1976 = vmatpush.bf16.msrb.mxu1 %v2759_v40 }
 0x22c   : > { %1957 = vmatpush.bf16.msrb.mxu0 %v2751_v26  ;;  %2781 = vmatpush.bf16.msrb.mxu3 %v2751_v26 }
 0x22e   : > { %1995 = vmatpush.bf16.msrb.mxu2 %v2767_v31 }
 0x22f   : > { %1977 = vmatpush.bf16.msrb.mxu1 %v2758_v43 }
 0x230   : > { %1958 = vmatpush.bf16.msrb.mxu0 %v2750_v45  ;;  %2782 = vmatpush.bf16.msrb.mxu3 %v2750_v45 }
 0x231   : > { %1684 = vmatmul.bf16.gmra.mxu1 %v1497_v8  ;;  %1703 = vmatmul.bf16.gmra.mxu2 %v1509_v11 }
 0x232   : > { %1996 = vmatpush.bf16.msrb.mxu2 %v2766_v59 }
 0x290   : > { %v1718_v35 = vpop.f32.mrf.mxu3 }
 0x298   : > { %v1720_v44 = vpop.f32.mrf.mxu3 }
 0x29e   : > { %v1680_v58 = vpop.f32.mrf.mxu1 }
 0x29f   : > { %v1681_v38 = vadd.f32 %v2881_v34, %v1680_v58 }
 0x2a0   : > { %v1723_v2 = vpop.f32.mrf.mxu3 }
 0x2a4   : > { %v1699_v10 = vpop.f32.mrf.mxu2 }
 0x2a5   : > { %v1700_v41 = vadd.f32 %v1699_v10, %v1681_v38 }
 0x2a6   : > { %v1682_v42 = vpop.f32.mrf.mxu1 }
 0x2a7   : > { %v1719_v27 = vadd.f32 %v1718_v35, %v1700_v41  ;;  %v1683_v51 = vadd.f32 %v2881_v34, %v1682_v42 }
 0x2a8   : > { %v1725_v21 = vpop.f32.mrf.mxu3 }
 0x2a9   : > { %v1728_v54 = vmax.f32 %v1719_v27, 0.0 }
 0x2ab   : > { %v1764_v60 = vpack.c.bf16 %v1728_v54, %v1728_v54  ;;  %v1732_v15 = vrot.slane %v1728_v54, 4  ;;  %v1748_v16 = vrot.slane %v1728_v54, 6 }
 0x2ac   : > { %v1701_v52 = vpop.f32.mrf.mxu2 }
 0x2ad   : > { %v1702_v37 = vadd.f32 %v1701_v52, %v1683_v51  ;;  %v1796_v4 = vunpack.c.l.b16 %v1764_v60 }
 0x2ae   : > { %v1685_v9 = vpop.f32.mrf.mxu1 }
 0x2af   : > { %v1721_v57 = vadd.f32 %v1720_v44, %v1702_v37  ;;  %v1686_v0 = vadd.f32 %v2881_v34, %v1685_v9 }
 0x2b1   : > { %v3599_v1 = vmax.f32 %v1721_v57, 0.0 }
 0x2b3   : > { %v1765_v50 = vpack.c.bf16 %v3599_v1, %v3599_v1  ;;  %v1733_v56 = vrot.slane %v3599_v1, 4  ;;  %v1749_v5 = vrot.slane %v3599_v1, 6 }
 0x2b4   : > { %v1704_v3 = vpop.f32.mrf.mxu2 }
 0x2b5   : > { %v1797_v62 = vunpack.c.l.b16 %v1765_v50  ;;  %v1705_v47 = vadd.f32 %v1704_v3, %v1686_v0  ;;  %v1738_v31 = vsel %vm1435_vm6, %v1732_v15, %v1733_v56  ;;  %v1754_v24 = vsel %vm564_vm13, %v1748_v16, %v1749_v5 }
 0x2b6   : > { %v1687_v11 = vpop.f32.mrf.mxu1  ;;  %v1741_v58 = vsel %vm1457_vm7, 0.0, %v1738_v31  ;;  %v1757_v33 = vsel %vm586_vm1, 0.0, %v1754_v24 }
 0x2b7   : > { %v1724_v7 = vadd.f32 %v1723_v2, %v1705_v47  ;;  %v1800_v8 = vpack.c.b16 %v1797_v62, %v1796_v4  ;;  %v1688_v14 = vadd.f32 %v2881_v34, %v1687_v11  ;;  %v1745_v38 = vpack.c.bf16 %v1741_v58, %v1741_v58 }
 0x2b8   : > { %v1761_v40 = vpack.c.bf16 %v1757_v33, %v1757_v33 }
 0x2b9   : > { %v1730_v12 = vmax.f32 %v1724_v7, 0.0  ;;  %1997 = vmatmul.bf16.vlgmr.msrb.gmra.mxu2 %v1800_v8  ;;  %v1773_v52 = vunpack.c.l.b16 %v1745_v38 }
 0x2ba   : > { %v1785_v54 = vunpack.c.l.b16 %v1761_v40 }
 0x2bb   : > { %v1734_v13 = vrot.slane %v1730_v12, 4  ;;  %v1766_v29 = vpack.c.bf16 %v1730_v12, %v1730_v12  ;;  %v1750_v0 = vrot.slane %v1730_v12, 6  ;;  %v2882_v12 = vld [vmem:[%s3695_s9] ss:$0 sm:$0xff] }
 0x2bc   : > { %v1706_v17 = vpop.f32.mrf.mxu2 }
 0x2bd   : > { %v1707_v19 = vadd.f32 %v1706_v17, %v1688_v14  ;;  %v1737_v61 = vsel %vm1435_vm6, %v1733_v56, %v1734_v13  ;;  %v1798_v22 = vunpack.c.l.b16 %v1766_v29  ;;  %v1753_v48 = vsel %vm564_vm13, %v1749_v5, %v1750_v0 }
 0x2be   : > { %v1742_v30 = vsel %vm1458_vm10, 0.0, %v1737_v61  ;;  %v1758_v3 = vsel %vm587_vm2, 0.0, %v1753_v48 }
 0x2bf   : > { %v1726_v59 = vadd.f32 %v1725_v21, %v1707_v19  ;;  %v1746_v10 = vpack.c.bf16 %v1742_v30, %v1742_v30  ;;  %v1762_v62 = vpack.c.bf16 %v1758_v3, %v1758_v3 }
 0x2c1   : > { %v1731_v28 = vmax.f32 %v1726_v59, 0.0  ;;  %v1774_v9 = vunpack.c.l.b16 %v1746_v10  ;;  %v1786_v7 = vunpack.c.l.b16 %v1762_v62 }
 0x2c3   : > { %v1735_v34 = vrot.slane %v1731_v28, 4  ;;  %v1751_v35 = vrot.slane %v1731_v28, 6  ;;  %v1767_v36 = vpack.c.bf16 %v1731_v28, %v1731_v28 }
 0x2c5   : > { %v1799_v26 = vunpack.c.l.b16 %v1767_v36  ;;  %v1739_v41 = vsel %vm1435_vm6, %v1735_v34, %v1732_v15  ;;  %v1736_v6 = vsel %vm1435_vm6, %v1734_v13, %v1735_v34  ;;  %v1755_v53 = vsel %vm564_vm13, %v1751_v35, %v1748_v16 }
 0x2c6   : > { %v1740_v63 = vsel %vm1456_vm8, 0.0, %v1739_v41  ;;  %v1743_v42 = vsel %vm1459_vm9, 0.0, %v1736_v6  ;;  %v1756_v43 = vsel %vm585_vm15, 0.0, %v1755_v53  ;;  %v1752_v32 = vsel %vm564_vm13, %v1750_v0, %v1751_v35 }
 0x2c7   : > { %v1801_v27 = vpack.c.b16 %v1799_v26, %v1798_v22  ;;  %v1744_v45 = vpack.c.bf16 %v1740_v63, %v1740_v63  ;;  %v1747_v44 = vpack.c.bf16 %v1743_v42, %v1743_v42  ;;  %v1760_v51 = vpack.c.bf16 %v1756_v43, %v1756_v43 }
 0x2c8   : > { %v1759_v2 = vsel %vm588_vm3, 0.0, %v1752_v32 }
 0x2c9   : > { %2002 = vmatmul.bf16.gmra.mxu2 %v1801_v27  ;;  %v1772_v37 = vunpack.c.l.b16 %v1744_v45  ;;  %v1775_v57 = vunpack.c.l.b16 %v1747_v44  ;;  %v1784_v60 = vunpack.c.l.b16 %v1760_v51  ;;  %v1763_v4 = vpack.c.bf16 %v1759_v2, %v1759_v2 }
 0x2cb   : > { %v1776_v1 = vpack.c.b16 %v1773_v52, %v1772_v37  ;;  %v1777_v23 = vpack.c.b16 %v1775_v57, %v1774_v9  ;;  %v1788_v50 = vpack.c.b16 %v1785_v54, %v1784_v60  ;;  %v1787_v47 = vunpack.c.l.b16 %v1763_v4 }
 0x2cd   : > { %1959 = vmatmul.bf16.vlgmr.msrb.gmra.mxu0 %v1776_v1  ;;  %1964 = vmatmul.bf16.vlgmr.msrb.gmra.mxu3 %v1777_v23  ;;  %v1789_v8 = vpack.c.b16 %v1787_v47, %v1786_v7 }
 0x2ce   : > { %1978 = vmatmul.bf16.vlgmr.msrb.gmra.mxu1 %v1788_v50 }
 0x2de   : > { %1983 = vmatmul.bf16.gmra.mxu1 %v1789_v8 }
 0x33c   : > { %v1998_v11 = vpop.f32.mrf.mxu2 }
 0x344   : > { %v2000_v14 = vpop.f32.mrf.mxu2 }
 0x34a   : > { %v1960_v25 = vpop.f32.mrf.mxu0 }
 0x34b   : > { %v1961_v56 = vadd.f32 %v2882_v12, %v1960_v25  ;;  %v1979_v5 = vpop.f32.mrf.mxu1 }
 0x34c   : > { %v2003_v28 = vpop.f32.mrf.mxu2 }
 0x34d   : > { %v1980_v20 = vadd.f32 %v1979_v5, %v1961_v56 }
 0x34f   : > { %v1999_v13 = vadd.f32 %v1998_v11, %v1980_v20 }
 0x350   : > { %v1965_v31 = vpop.f32.mrf.mxu3 }
 0x351   : > { %v2008_v49 = vmax.f32 %v1999_v13, 0.0  ;;  %v1966_v29 = vadd.f32 %v2882_v12, %v1965_v31 }
 0x352   : > { %v1962_v15 = vpop.f32.mrf.mxu0 }
 0x353   : > { %v2012_v16 = vadd.f32 %v2008_v49, %v3523_v39  ;;  %v1963_v17 = vadd.f32 %v2882_v12, %v1962_v15  ;;  %v1981_v19 = vpop.f32.mrf.mxu1 }
 0x354   : > { %v2005_v41 = vpop.f32.mrf.mxu2 }
 0x355   : > { %v2016_v21 = vmax.f32 %v2012_v16, 0.0  ;;  %v1982_v61 = vadd.f32 %v1981_v19, %v1963_v17 }
 0x357   : > { %2020 = vst [vmem:[%s3643_s25] sm:$0xff] %v2016_v21  ;;  %v2001_v24 = vadd.f32 %v2000_v14, %v1982_v61 }
 0x358   : > { %v1967_v35 = vpop.f32.mrf.mxu3 }
 0x359   : > { %v2009_v59 = vmax.f32 %v2001_v24, 0.0  ;;  %v1968_v22 = vadd.f32 %v2882_v12, %v1967_v35 }
 0x35b   : > { %v2013_v58 = vadd.f32 %v2009_v59, %v3526_v46  ;;  %v1984_v39 = vpop.f32.mrf.mxu1 }
 0x35c   : > { %v1985_v30 = vadd.f32 %v1984_v39, %v1966_v29 }
 0x35d   : > { %v2017_v33 = vmax.f32 %v2013_v58, 0.0 }
 0x35e   : > { %v2004_v34 = vadd.f32 %v2003_v28, %v1985_v30 }
 0x35f   : > { %2021 = vst [vmem:[%s3643_s25 + $0x8] sm:$0xff] %v2017_v33 }
 0x360   : > { %v2010_v36 = vmax.f32 %v2004_v34, 0.0 }
 0x362   : > { %v2014_v38 = vadd.f32 %v2010_v36, %v3542_v55 }
 0x363   : > { %v1986_v10 = vpop.f32.mrf.mxu1 }
 0x364   : > { %v2018_v40 = vmax.f32 %v2014_v38, 0.0  ;;  %v1987_v26 = vadd.f32 %v1986_v10, %v1968_v22 }
 0x366   : > { %2022 = vst [vmem:[%s3643_s25 + $0x10] sm:$0xff] %v2018_v40  ;;  %v2006_v46 = vadd.f32 %v2005_v41, %v1987_v26 }
 0x368   : > { %v2011_v6 = vmax.f32 %v2006_v46, 0.0 }
 0x36a   : > { %v2015_v55 = vadd.f32 %v2011_v6, %v3549_v18 }
 0x36c   : > { %v2019_v53 = vmax.f32 %v2015_v55, 0.0 }
 0x36e   : > { %2023 = vst [vmem:[%s3643_s25 + $0x18] sm:$0xff] %v2019_v53 }
 0x36f   : > { %3060 = shalt.err (!%p3057_p10)
}
 0x370   : > { %s3118_s12 = smov 128   ;;  %s3119_s25 = smov 8  }
 0x371   : > { %2801 = dma.vmem_to_hbm [thread:$0]  (%p3262_p3), %s2038_s29, 512, %s2040_s18, %s2025_s17, %s3118_s12, %s3118_s12, %s3119_s25  }
 0x372 PF: > { %s2054_s6 = sand.u32 1, %s3095_s13   ;;  %p3715_p12 = scmp.ge.s32.totalorder %s3107_s16, 2 }
 0x373   : > { %s2055_s23 = scalar_lea.sflag [#allocation4], %s2054_s6 }
 0x374   : > { %p2821_p13 = pnand %p3715_p12, %p3210_p6 }
 0x376   : > { %p2822_p0 = pneg %p2821_p13 }
 0x378   : > { %3090 = dma.done.wait (%p2822_p0), %s2055_s23, 512  }
 0x379   : > { %3092 = vsyncadd (%p2822_p0), %s2055_s23, 4294966784  ;;  %p25_p5 = scmp.ge.s32.totalorder %s3252_s30, 4   ;;  %s3716_s13 = smov %s3099_s14 }
 0x37a   : > { %s3717_s14 = smov %s3103_s15  ;;  %s3718_s15 = smov %s3268_s2 }
 0x37b   : > { %s3719_s16 = smov %s3252_s30  ;;  %27 = sbr.rel (!%p25_p5) target bundleno = 12 (0xc), region = 121 }
 0x380   :  { %2061 = vsyncpa [#allocation3], 1 }
 0x381   :  { %2063 = vsyncpa [#allocation3 + $0x1], 1 }
 0x382   :  { %2064 = vsyncpa [#allocation6], 1 }
 0x383   :  { %2065 = vsyncpa [#allocation9], 1 }
 0x384   :  { %2066 = vsyncpa [#allocation4], 1 }
 0x385   :  { %2068 = vsyncpa [#allocation4 + $0x1], 1 }

</bundles_post_ra>
